<compile_context>
chip_gen: v7x
topology: tpu7x:2x2x1
jax: 0.10.0
libtpu: 0.0.40
codegen_flags: <defaults>
</compile_context>

<pallas_src>
import functools
import numpy as np
import jax
import jax.numpy as jnp
from jax.experimental import pallas as pl
from jax.experimental.pallas import tpu as pltpu


def _layernorm(x, gamma, beta, eps=1e-5):
    mean = jnp.mean(x, axis=-1, keepdims=True)
    var = jnp.mean((x - mean) ** 2, axis=-1, keepdims=True)
    return (x - mean) * jax.lax.rsqrt(var + eps) * gamma + beta


def encoder_kernel(batch_blk, seq, hidden, n_head,
                   x_ref, mask_ref,
                   wqkv_ref, bqkv_ref, wo_ref, bo_ref, g1_ref, b1_ref,
                   wl_ref, bl_ref, wo2_ref, bo2_ref, g2_ref, b2_ref,
                   out_ref, ctx_ref):
    """One grid step == one EncoderLayer applied to one batch block (resident in VMEM).

    The carried activation is out_ref itself (its block index is constant over the layer
    axis, so it stays resident in VMEM across layers and is written to HBM only once).
    """
    layer = pl.program_id(1)
    B, S, H = batch_blk, seq, hidden
    hd = H // n_head
    BS = B * S
    bf16 = jnp.bfloat16

    @pl.when(layer == 0)
    def _():
        out_ref[...] = x_ref[...]

    x = out_ref[...]                                   # (BS, H) f32 carried activation

    # ---------------- multi-head attention ----------------
    # Fused QKV: a single (BS,H)@(H,3H) matmul; 1/sqrt(hd) is folded into the Q columns.
    qkv = jnp.dot(x.astype(bf16), wqkv_ref[0],
                  preferred_element_type=jnp.float32) + bqkv_ref[0]      # (BS, 3H) f32

    mask = mask_ref[...]                               # (B, S, S) additive bias (-1e30)

    for h in range(n_head):
        q_h = qkv[:, h * hd:(h + 1) * hd].reshape(B, S, hd).astype(bf16)
        k_h = qkv[:, H + h * hd:H + (h + 1) * hd].reshape(B, S, hd).astype(bf16)
        v_h = qkv[:, 2 * H + h * hd:2 * H + (h + 1) * hd].reshape(B, S, hd).astype(bf16)

        s = jnp.einsum('bqd,bkd->bqk', q_h, k_h,
                       preferred_element_type=jnp.float32) + mask        # (B, S, S)
        s = s - jnp.max(s, axis=-1, keepdims=True)
        p = jnp.exp(s)
        p = p * pl.reciprocal(jnp.sum(p, axis=-1, keepdims=True), approx=True)

        ctx_h = jnp.einsum('bqk,bkd->bqd', p.astype(bf16), v_h,
                           preferred_element_type=jnp.float32)           # (B, S, hd)
        # head-concat along lanes (one-time relayout into the scratch)
        ctx_ref[:, h * hd:(h + 1) * hd] = ctx_h.reshape(BS, hd)

    # Single (BS,H)@(H,H) output projection over the full contraction dim H.
    o = jnp.dot(ctx_ref[...].astype(bf16), wo_ref[0],
                preferred_element_type=jnp.float32) + bo_ref[0]          # (BS, H)

    y = _layernorm(x + o, g1_ref[0], b1_ref[0])        # residual + LN (attention block)

    # ---------------- position-wise FFN ----------------
    h1 = jnp.dot(y.astype(bf16), wl_ref[0],
                 preferred_element_type=jnp.float32) + bl_ref[0]
    h1 = jnp.maximum(h1, 0.0)
    o2 = jnp.dot(h1.astype(bf16), wo2_ref[0],
                 preferred_element_type=jnp.float32) + bo2_ref[0]

    out_ref[...] = _layernorm(y + o2, g2_ref[0], b2_ref[0]).astype(out_ref.dtype)


_WEIGHT_ORDER = ["wqkv", "bqkv", "wo", "bo", "g1", "b1",
                 "wl", "bl", "wo2", "bo2", "g2", "b2"]


def encoder_pallas(xz, mask_bool, packed, n_head, *, batch_blocks=1):
    """xz: (B, S, H) f32; mask_bool: (B, 1, S, S) bool (True == masked).

    batch_blocks splits the batch over the leading ("parallel") grid axis; set it to 2
    on v7x to use both TensorCores. The layer axis stays sequential ("arbitrary") since
    it carries the resident activation.
    """
    B, S, H = xz.shape
    assert B % batch_blocks == 0
    Bb = B // batch_blocks
    BS_blk = Bb * S
    n_layer = packed["wqkv"].shape[0]

    x_flat = xz.reshape(B * S, H)
    # Additive mask bias: finite -1e30 avoids any inf-inf NaN hazard after max-subtraction.
    mask_bias = jnp.where(mask_bool[:, 0], -1e30, 0.0).astype(jnp.float32)   # (B, S, S)

    weight_args = [packed[name] for name in _WEIGHT_ORDER]

    def w_spec(a):
        zeros = (0,) * (a.ndim - 1)
        return pl.BlockSpec((1,) + a.shape[1:], lambda bb, l, _z=zeros: (l,) + _z)

    kernel = functools.partial(encoder_kernel, Bb, S, H, n_head)
    out_flat = pl.pallas_call(
        kernel,
        out_shape=jax.ShapeDtypeStruct((B * S, H), xz.dtype),
        grid=(batch_blocks, n_layer),
        in_specs=[pl.BlockSpec((BS_blk, H), lambda bb, l: (bb, 0)),
                  pl.BlockSpec((Bb, S, S), lambda bb, l: (bb, 0, 0))]
                 + [w_spec(a) for a in weight_args],
        out_specs=pl.BlockSpec((BS_blk, H), lambda bb, l: (bb, 0)),
        scratch_shapes=[pltpu.VMEM((BS_blk, H), jnp.float32)],   # head-concat staging
        compiler_params=pltpu.CompilerParams(
            dimension_semantics=("parallel", "arbitrary"),
            vmem_limit_bytes=64 * 1024 * 1024),
    )(x_flat, mask_bias, *weight_args)
    return out_flat.reshape(B, S, H)


def pack_params(layer_params, n_head):
    """Stack per-layer torch-layout params into pre-transposed, fused kernel form.

    No batch replication: per layer the streamed weights are exactly
      wqkv (H, 3H), wo (H, H), wl (H, dff), wo2 (dff, H)  [bf16]
    plus lane-dense (1, k) biases / LayerNorm params in f32.
    """
    H = int(np.asarray(layer_params[0]["wq"]).shape[0])
    hd = H // n_head
    scale = 1.0 / (np.sqrt(np.float32(hd)) + 1e-8)

    wqkv, bqkv, wo, bo, g1, b1 = [], [], [], [], [], []
    wl, bl, wo2, bo2, g2, b2 = [], [], [], [], [], []
    for p in layer_params:
        p = {k: np.asarray(v, np.float32) for k, v in p.items()}
        # Column order of the fused QKV weight is [Q | K | V]; inside each block the
        # head-h columns are h*hd:(h+1)*hd, matching the in-kernel head slicing and the
        # torch split_heads column ordering. Scale folded into Q weight+bias.
        wqkv.append(np.concatenate([p["wq"].T * scale, p["wk"].T, p["wv"].T], axis=1))
        bqkv.append(np.concatenate([p["bq"] * scale, p["bk"], p["bv"]], axis=1))
        wo.append(p["wo"].T)            # (H, H): rows = head-major concat of ctx features
        bo.append(p["bo"])
        g1.append(p["g1"]); b1.append(p["b1"])
        wl.append(p["wl"].T); bl.append(p["bl"])
        wo2.append(p["wo2"].T); bo2.append(p["bo2"])
        g2.append(p["g2"]); b2.append(p["b2"])

    bf16, f32 = jnp.bfloat16, jnp.float32
    st = lambda xs, dt: jnp.asarray(np.stack(xs, 0), dt)
    return dict(wqkv=st(wqkv, bf16), bqkv=st(bqkv, f32),
                wo=st(wo, bf16), bo=st(bo, f32), g1=st(g1, f32), b1=st(b1, f32),
                wl=st(wl, bf16), bl=st(bl, f32), wo2=st(wo2, bf16), bo2=st(bo2, f32),
                g2=st(g2, f32), b2=st(b2, f32))


def init_layer_params(key, H, dff):
    ks = jax.random.split(key, 6)

    def lin(k, out_dim, in_dim):
        kw, kb = jax.random.split(k)
        bound = 1.0 / np.sqrt(in_dim)
        w = jax.random.uniform(kw, (out_dim, in_dim), jnp.float32, -bound, bound)
        b = jax.random.uniform(kb, (1, out_dim), jnp.float32, -bound, bound)
        return w, b

    wq, bq = lin(ks[0], H, H)
    wk, bk = lin(ks[1], H, H)
    wv, bv = lin(ks[2], H, H)
    wo, bo = lin(ks[3], H, H)
    wl, bl = lin(ks[4], dff, H)
    wo2, bo2 = lin(ks[5], H, dff)
    return dict(wq=wq, bq=bq, wk=wk, bk=bk, wv=wv, bv=bv, wo=wo, bo=bo,
                g1=jnp.ones((1, H), jnp.float32), b1=jnp.zeros((1, H), jnp.float32),
                wl=wl, bl=bl, wo2=wo2, bo2=bo2,
                g2=jnp.ones((1, H), jnp.float32), b2=jnp.zeros((1, H), jnp.float32))


def reference_encoder(xz, mask_bool, layer_params, n_head):
    """Pure-JAX f32 re-implementation of the PyTorch forward (eval mode)."""
    def ln(x, g, b, eps=1e-5):
        m = jnp.mean(x, axis=-1, keepdims=True)
        v = jnp.mean((x - m) ** 2, axis=-1, keepdims=True)
        return (x - m) / jnp.sqrt(v + eps) * g + b

    x = xz
    B, S, H = x.shape
    hd = H // n_head
    for p in layer_params:
        q = x @ p["wq"].T + p["bq"][0]
        k = x @ p["wk"].T + p["bk"][0]
        v = x @ p["wv"].T + p["bv"][0]
        split = lambda t: t.reshape(B, S, n_head, hd).transpose(0, 2, 1, 3)
        qh, kh, vh = split(q), split(k), split(v)
        score = qh @ kh.transpose(0, 1, 3, 2) / (jnp.sqrt(jnp.float32(hd)) + 1e-8)
        score = jnp.where(mask_bool, -jnp.inf, score)
        attn = jax.nn.softmax(score, axis=-1)
        ctx = (attn @ vh).transpose(0, 2, 1, 3).reshape(B, S, H)
        o = ctx @ p["wo"].T + p["bo"][0]
        y = ln(x + o, p["g1"][0], p["b1"][0])
        h = jax.nn.relu(y @ p["wl"].T + p["bl"][0])
        o2 = h @ p["wo2"].T + p["bo2"][0]
        x = ln(y + o2, p["g2"][0], p["b2"][0])
    return x


if __name__ == "__main__":
    B, S, H = 2, 8, 32          # batch, num_steps, num_hiddens
    n_head, n_layer = 2, 4
    dff = 4 * H

    key = jax.random.PRNGKey(0)
    kx, km, kp = jax.random.split(key, 3)

    xz = jax.random.normal(kx, (B, S, H), jnp.float32)
    # Random attention mask (True == masked); keep the diagonal unmasked so every softmax
    # row has at least one valid entry (matches what a sane caller of the module does).
    mask_bool = jax.random.bernoulli(km, 0.3, (B, 1, S, S))
    eye = jnp.eye(S, dtype=bool)[None, None]
    mask_bool = jnp.logical_and(mask_bool, jnp.logical_not(eye))

    layer_keys = jax.random.split(kp, n_layer)
    layer_params = [init_layer_params(k, H, dff) for k in layer_keys]
    packed = pack_params(layer_params, n_head)

    out = encoder_pallas(xz, mask_bool, packed, n_head, batch_blocks=1)
    out = jax.block_until_ready(out)
    assert out.shape == (B, S, H)

    ref = reference_encoder(xz, mask_bool, layer_params, n_head)
    # bf16 matmul inputs (f32 accumulation) + approx reciprocal -> loosened tolerance.
    np.testing.assert_allclose(np.asarray(out), np.asarray(ref), atol=5e-2, rtol=5e-2)

    print("KERNEL_OK")
</pallas_src>

<mosaic_0001>
module attributes {stable_mosaic.version = 11 : i64} {
  func.func @encoder_kernel(%arg0: i32, %arg1: i32, %arg2: memref<16x32xf32, #tpu.memory_space<vmem>>, %arg3: memref<2x8x8xf32, #tpu.memory_space<vmem>>, %arg4: memref<1x32x96xbf16, #tpu.memory_space<vmem>>, %arg5: memref<1x1x96xf32, #tpu.memory_space<vmem>>, %arg6: memref<1x32x32xbf16, #tpu.memory_space<vmem>>, %arg7: memref<1x1x32xf32, #tpu.memory_space<vmem>>, %arg8: memref<1x1x32xf32, #tpu.memory_space<vmem>>, %arg9: memref<1x1x32xf32, #tpu.memory_space<vmem>>, %arg10: memref<1x32x128xbf16, #tpu.memory_space<vmem>>, %arg11: memref<1x1x128xf32, #tpu.memory_space<vmem>>, %arg12: memref<1x128x32xbf16, #tpu.memory_space<vmem>>, %arg13: memref<1x1x32xf32, #tpu.memory_space<vmem>>, %arg14: memref<1x1x32xf32, #tpu.memory_space<vmem>>, %arg15: memref<1x1x32xf32, #tpu.memory_space<vmem>>, %arg16: memref<16x32xf32, #tpu.memory_space<vmem>>, %arg17: memref<16x32xf32, #tpu.memory_space<vmem>>) attributes {dimension_semantics = [#tpu.dimension_semantics<parallel>, #tpu.dimension_semantics<arbitrary>], iteration_bounds = array<i64: 1, 4>, scalar_prefetch = 0 : i64, scratch_operands = 1 : i64, tpu.core_type = #tpu.core_type<tc>, window_params = [{transform_indices = @transform_0, window_bounds = array<i64: 16, 32>}, {transform_indices = @transform_1, window_bounds = array<i64: 2, 8, 8>}, {transform_indices = @transform_2, window_bounds = array<i64: 1, 32, 96>}, {transform_indices = @transform_3, window_bounds = array<i64: 1, 1, 96>}, {transform_indices = @transform_4, window_bounds = array<i64: 1, 32, 32>}, {transform_indices = @transform_5, window_bounds = array<i64: 1, 1, 32>}, {transform_indices = @transform_6, window_bounds = array<i64: 1, 1, 32>}, {transform_indices = @transform_7, window_bounds = array<i64: 1, 1, 32>}, {transform_indices = @transform_8, window_bounds = array<i64: 1, 32, 128>}, {transform_indices = @transform_9, window_bounds = array<i64: 1, 1, 128>}, {transform_indices = @transform_10, window_bounds = array<i64: 1, 128, 32>}, {transform_indices = @transform_11, window_bounds = array<i64: 1, 1, 32>}, {transform_indices = @transform_12, window_bounds = array<i64: 1, 1, 32>}, {transform_indices = @transform_13, window_bounds = array<i64: 1, 1, 32>}, {transform_indices = @transform_14, window_bounds = array<i64: 16, 32>}]} {
    %c0_i32 = arith.constant 0 : i32
    %0 = arith.cmpi eq, %arg1, %c0_i32 : i32
    %1 = arith.extui %0 : i1 to i32
    %c0_i32_0 = arith.constant 0 : i32
    %2 = arith.cmpi ne, %1, %c0_i32_0 : i32
    scf.if %2 {
      %c0_70 = arith.constant 0 : index
      %c0_71 = arith.constant 0 : index
      %145 = vector.load %arg2[%c0_70, %c0_71] : memref<16x32xf32, #tpu.memory_space<vmem>>, vector<16x32xf32>
      %c0_72 = arith.constant 0 : index
      %c0_73 = arith.constant 0 : index
      %146 = vector.load %arg16[%c0_72, %c0_73] : memref<16x32xf32, #tpu.memory_space<vmem>>, vector<16x32xf32>
      tpu.vector_store %arg16[%c0_72, %c0_73], %145 {strides = array<i32>} : memref<16x32xf32, #tpu.memory_space<vmem>>, vector<16x32xf32>,
    } else {
    }
    %c0 = arith.constant 0 : index
    %c0_1 = arith.constant 0 : index
    %3 = vector.load %arg16[%c0, %c0_1] : memref<16x32xf32, #tpu.memory_space<vmem>>, vector<16x32xf32>
    %4 = arith.truncf %3 : vector<16x32xf32> to vector<16x32xbf16>
    %c0_2 = arith.constant 0 : index
    %c0_3 = arith.constant 0 : index
    %c0_4 = arith.constant 0 : index
    %5 = vector.load %arg4[%c0_2, %c0_3, %c0_4] : memref<1x32x96xbf16, #tpu.memory_space<vmem>>, vector<1x32x96xbf16>
    %6 = vector.shape_cast %5 : vector<1x32x96xbf16> to vector<32x96xbf16>
    %cst = arith.constant dense<0.000000e+00> : vector<16x96xf32>
    %7 = tpu.matmul %4, %6, %cst {dimension_numbers = #tpu.dot_dimension_numbers<[1], [0], [0], [1], [0, 0, 1, 1], [], []>} : vector<16x32xbf16>, vector<32x96xbf16>, vector<16x96xf32> -> vector<16x96xf32>
    %c0_5 = arith.constant 0 : index
    %c0_6 = arith.constant 0 : index
    %c0_7 = arith.constant 0 : index
    %8 = vector.load %arg5[%c0_5, %c0_6, %c0_7] : memref<1x1x96xf32, #tpu.memory_space<vmem>>, vector<1x1x96xf32>
    %9 = vector.shape_cast %8 : vector<1x1x96xf32> to vector<1x96xf32>
    %10 = vector.broadcast %9 : vector<1x96xf32> to vector<16x96xf32>
    %11 = arith.addf %7, %10 : vector<16x96xf32>
    %c0_8 = arith.constant 0 : index
    %c0_9 = arith.constant 0 : index
    %c0_10 = arith.constant 0 : index
    %12 = vector.load %arg3[%c0_8, %c0_9, %c0_10] : memref<2x8x8xf32, #tpu.memory_space<vmem>>, vector<2x8x8xf32>
    %13 = vector.extract_strided_slice %11 {offsets = [0, 0], sizes = [16, 16], strides = [1, 1]} : vector<16x96xf32> to vector<16x16xf32>
    %14 = vector.shape_cast %13 : vector<16x16xf32> to vector<2x8x16xf32>
    %15 = arith.truncf %14 : vector<2x8x16xf32> to vector<2x8x16xbf16>
    %16 = vector.extract_strided_slice %11 {offsets = [0, 32], sizes = [16, 16], strides = [1, 1]} : vector<16x96xf32> to vector<16x16xf32>
    %17 = vector.shape_cast %16 : vector<16x16xf32> to vector<2x8x16xf32>
    %18 = arith.truncf %17 : vector<2x8x16xf32> to vector<2x8x16xbf16>
    %19 = vector.extract_strided_slice %11 {offsets = [0, 64], sizes = [16, 16], strides = [1, 1]} : vector<16x96xf32> to vector<16x16xf32>
    %20 = vector.shape_cast %19 : vector<16x16xf32> to vector<2x8x16xf32>
    %21 = arith.truncf %20 : vector<2x8x16xf32> to vector<2x8x16xbf16>
    "tpu.trace_start"() <{level = 10 : i32, message = "bqd,bkd->bqk"}> : () -> ()
    %cst_11 = arith.constant dense<0.000000e+00> : vector<2x8x8xf32>
    %22 = tpu.matmul %15, %18, %cst_11 {dimension_numbers = #tpu.dot_dimension_numbers<[2], [2], [1], [1], [0, 0, 0, 1, 1, 1], [0], [0]>} : vector<2x8x16xbf16>, vector<2x8x16xbf16>, vector<2x8x8xf32> -> vector<2x8x8xf32>
    "tpu.trace_stop"() : () -> ()
    %23 = arith.addf %22, %12 : vector<2x8x8xf32>
    %cst_12 = arith.constant dense<0xFF800000> : vector<2x8xf32>
    %24 = vector.multi_reduction <maximumf>, %23, %cst_12 [2] : vector<2x8x8xf32> to vector<2x8xf32>
    %25 = vector.shape_cast %24 : vector<2x8xf32> to vector<2x8x1xf32>
    %26 = vector.broadcast %25 : vector<2x8x1xf32> to vector<2x8x8xf32>
    %27 = arith.subf %23, %26 : vector<2x8x8xf32>
    %28 = math.exp %27 : vector<2x8x8xf32>
    %cst_13 = arith.constant dense<0.000000e+00> : vector<2x8xf32>
    %29 = vector.multi_reduction <add>, %28, %cst_13 [2] : vector<2x8x8xf32> to vector<2x8xf32>
    %30 = vector.shape_cast %29 : vector<2x8xf32> to vector<2x8x1xf32>
    %31 = tpu.reciprocal %30 {approx = true} : vector<2x8x1xf32> -> vector<2x8x1xf32>
    %32 = vector.broadcast %31 : vector<2x8x1xf32> to vector<2x8x8xf32>
    %33 = arith.mulf %28, %32 : vector<2x8x8xf32>
    %34 = arith.truncf %33 : vector<2x8x8xf32> to vector<2x8x8xbf16>
    "tpu.trace_start"() <{level = 10 : i32, message = "bqk,bkd->bqd"}> : () -> ()
    %cst_14 = arith.constant dense<0.000000e+00> : vector<2x8x16xf32>
    %35 = tpu.matmul %34, %21, %cst_14 {dimension_numbers = #tpu.dot_dimension_numbers<[2], [1], [1], [2], [0, 0, 0, 1, 1, 2], [0], [0]>} : vector<2x8x8xbf16>, vector<2x8x16xbf16>, vector<2x8x16xf32> -> vector<2x8x16xf32>
    "tpu.trace_stop"() : () -> ()
    %36 = vector.shape_cast %35 : vector<2x8x16xf32> to vector<16x16xf32>
    %c0_15 = arith.constant 0 : index
    %c0_16 = arith.constant 0 : index
    %37 = vector.load %arg17[%c0_15, %c0_16] : memref<16x32xf32, #tpu.memory_space<vmem>>, vector<16x16xf32>
    tpu.vector_store %arg17[%c0_15, %c0_16], %36 {strides = array<i32>} : memref<16x32xf32, #tpu.memory_space<vmem>>, vector<16x16xf32>,
    %38 = vector.extract_strided_slice %11 {offsets = [0, 16], sizes = [16, 16], strides = [1, 1]} : vector<16x96xf32> to vector<16x16xf32>
    %39 = vector.shape_cast %38 : vector<16x16xf32> to vector<2x8x16xf32>
    %40 = arith.truncf %39 : vector<2x8x16xf32> to vector<2x8x16xbf16>
    %41 = vector.extract_strided_slice %11 {offsets = [0, 48], sizes = [16, 16], strides = [1, 1]} : vector<16x96xf32> to vector<16x16xf32>
    %42 = vector.shape_cast %41 : vector<16x16xf32> to vector<2x8x16xf32>
    %43 = arith.truncf %42 : vector<2x8x16xf32> to vector<2x8x16xbf16>
    %44 = vector.extract_strided_slice %11 {offsets = [0, 80], sizes = [16, 16], strides = [1, 1]} : vector<16x96xf32> to vector<16x16xf32>
    %45 = vector.shape_cast %44 : vector<16x16xf32> to vector<2x8x16xf32>
    %46 = arith.truncf %45 : vector<2x8x16xf32> to vector<2x8x16xbf16>
    "tpu.trace_start"() <{level = 10 : i32, message = "bqd,bkd->bqk"}> : () -> ()
    %cst_17 = arith.constant dense<0.000000e+00> : vector<2x8x8xf32>
    %47 = tpu.matmul %40, %43, %cst_17 {dimension_numbers = #tpu.dot_dimension_numbers<[2], [2], [1], [1], [0, 0, 0, 1, 1, 1], [0], [0]>} : vector<2x8x16xbf16>, vector<2x8x16xbf16>, vector<2x8x8xf32> -> vector<2x8x8xf32>
    "tpu.trace_stop"() : () -> ()
    %48 = arith.addf %47, %12 : vector<2x8x8xf32>
    %cst_18 = arith.constant dense<0xFF800000> : vector<2x8xf32>
    %49 = vector.multi_reduction <maximumf>, %48, %cst_18 [2] : vector<2x8x8xf32> to vector<2x8xf32>
    %50 = vector.shape_cast %49 : vector<2x8xf32> to vector<2x8x1xf32>
    %51 = vector.broadcast %50 : vector<2x8x1xf32> to vector<2x8x8xf32>
    %52 = arith.subf %48, %51 : vector<2x8x8xf32>
    %53 = math.exp %52 : vector<2x8x8xf32>
    %cst_19 = arith.constant dense<0.000000e+00> : vector<2x8xf32>
    %54 = vector.multi_reduction <add>, %53, %cst_19 [2] : vector<2x8x8xf32> to vector<2x8xf32>
    %55 = vector.shape_cast %54 : vector<2x8xf32> to vector<2x8x1xf32>
    %56 = tpu.reciprocal %55 {approx = true} : vector<2x8x1xf32> -> vector<2x8x1xf32>
    %57 = vector.broadcast %56 : vector<2x8x1xf32> to vector<2x8x8xf32>
    %58 = arith.mulf %53, %57 : vector<2x8x8xf32>
    %59 = arith.truncf %58 : vector<2x8x8xf32> to vector<2x8x8xbf16>
    "tpu.trace_start"() <{level = 10 : i32, message = "bqk,bkd->bqd"}> : () -> ()
    %cst_20 = arith.constant dense<0.000000e+00> : vector<2x8x16xf32>
    %60 = tpu.matmul %59, %46, %cst_20 {dimension_numbers = #tpu.dot_dimension_numbers<[2], [1], [1], [2], [0, 0, 0, 1, 1, 2], [0], [0]>} : vector<2x8x8xbf16>, vector<2x8x16xbf16>, vector<2x8x16xf32> -> vector<2x8x16xf32>
    "tpu.trace_stop"() : () -> ()
    %61 = vector.shape_cast %60 : vector<2x8x16xf32> to vector<16x16xf32>
    %c0_21 = arith.constant 0 : index
    %c16 = arith.constant 16 : index
    %62 = vector.load %arg17[%c0_21, %c16] : memref<16x32xf32, #tpu.memory_space<vmem>>, vector<16x16xf32>
    tpu.vector_store %arg17[%c0_21, %c16], %61 {strides = array<i32>} : memref<16x32xf32, #tpu.memory_space<vmem>>, vector<16x16xf32>,
    %c0_22 = arith.constant 0 : index
    %c0_23 = arith.constant 0 : index
    %63 = vector.load %arg17[%c0_22, %c0_23] : memref<16x32xf32, #tpu.memory_space<vmem>>, vector<16x32xf32>
    %64 = arith.truncf %63 : vector<16x32xf32> to vector<16x32xbf16>
    %c0_24 = arith.constant 0 : index
    %c0_25 = arith.constant 0 : index
    %c0_26 = arith.constant 0 : index
    %65 = vector.load %arg6[%c0_24, %c0_25, %c0_26] : memref<1x32x32xbf16, #tpu.memory_space<vmem>>, vector<1x32x32xbf16>
    %66 = vector.shape_cast %65 : vector<1x32x32xbf16> to vector<32x32xbf16>
    %cst_27 = arith.constant dense<0.000000e+00> : vector<16x32xf32>
    %67 = tpu.matmul %64, %66, %cst_27 {dimension_numbers = #tpu.dot_dimension_numbers<[1], [0], [0], [1], [0, 0, 1, 1], [], []>} : vector<16x32xbf16>, vector<32x32xbf16>, vector<16x32xf32> -> vector<16x32xf32>
    %c0_28 = arith.constant 0 : index
    %c0_29 = arith.constant 0 : index
    %c0_30 = arith.constant 0 : index
    %68 = vector.load %arg7[%c0_28, %c0_29, %c0_30] : memref<1x1x32xf32, #tpu.memory_space<vmem>>, vector<1x1x32xf32>
    %69 = vector.shape_cast %68 : vector<1x1x32xf32> to vector<1x32xf32>
    %70 = vector.broadcast %69 : vector<1x32xf32> to vector<16x32xf32>
    %71 = arith.addf %67, %70 : vector<16x32xf32>
    %72 = arith.addf %3, %71 : vector<16x32xf32>
    %c0_31 = arith.constant 0 : index
    %c0_32 = arith.constant 0 : index
    %c0_33 = arith.constant 0 : index
    %73 = vector.load %arg8[%c0_31, %c0_32, %c0_33] : memref<1x1x32xf32, #tpu.memory_space<vmem>>, vector<1x1x32xf32>
    %74 = vector.shape_cast %73 : vector<1x1x32xf32> to vector<1x32xf32>
    %c0_34 = arith.constant 0 : index
    %c0_35 = arith.constant 0 : index
    %c0_36 = arith.constant 0 : index
    %75 = vector.load %arg9[%c0_34, %c0_35, %c0_36] : memref<1x1x32xf32, #tpu.memory_space<vmem>>, vector<1x1x32xf32>
    %76 = vector.shape_cast %75 : vector<1x1x32xf32> to vector<1x32xf32>
    %cst_37 = arith.constant dense<0.000000e+00> : vector<16xf32>
    %77 = vector.multi_reduction <add>, %72, %cst_37 [1] : vector<16x32xf32> to vector<16xf32>
    %78 = vector.shape_cast %77 : vector<16xf32> to vector<16x1xf32>
    %cst_38 = arith.constant 3.200000e+01 : f32
    %79 = vector.broadcast %cst_38 : f32 to vector<16x1xf32>
    %80 = arith.divf %78, %79 : vector<16x1xf32>
    %81 = vector.broadcast %80 : vector<16x1xf32> to vector<16x32xf32>
    %82 = arith.subf %72, %81 : vector<16x32xf32>
    %83 = arith.mulf %82, %82 : vector<16x32xf32>
    %cst_39 = arith.constant dense<0.000000e+00> : vector<16xf32>
    %84 = vector.multi_reduction <add>, %83, %cst_39 [1] : vector<16x32xf32> to vector<16xf32>
    %85 = vector.shape_cast %84 : vector<16xf32> to vector<16x1xf32>
    %cst_40 = arith.constant 3.200000e+01 : f32
    %86 = vector.broadcast %cst_40 : f32 to vector<16x1xf32>
    %87 = arith.divf %85, %86 : vector<16x1xf32>
    %88 = vector.broadcast %80 : vector<16x1xf32> to vector<16x32xf32>
    %89 = arith.subf %72, %88 : vector<16x32xf32>
    %cst_41 = arith.constant 9.99999974E-6 : f32
    %90 = vector.broadcast %cst_41 : f32 to vector<16x1xf32>
    %91 = arith.addf %87, %90 : vector<16x1xf32>
    %92 = math.rsqrt %91 : vector<16x1xf32>
    %93 = vector.broadcast %92 : vector<16x1xf32> to vector<16x32xf32>
    %94 = arith.mulf %89, %93 : vector<16x32xf32>
    %95 = vector.broadcast %74 : vector<1x32xf32> to vector<16x32xf32>
    %96 = arith.mulf %94, %95 : vector<16x32xf32>
    %97 = vector.broadcast %76 : vector<1x32xf32> to vector<16x32xf32>
    %98 = arith.addf %96, %97 : vector<16x32xf32>
    %99 = arith.truncf %98 : vector<16x32xf32> to vector<16x32xbf16>
    %c0_42 = arith.constant 0 : index
    %c0_43 = arith.constant 0 : index
    %c0_44 = arith.constant 0 : index
    %100 = vector.load %arg10[%c0_42, %c0_43, %c0_44] : memref<1x32x128xbf16, #tpu.memory_space<vmem>>, vector<1x32x128xbf16>
    %101 = vector.shape_cast %100 : vector<1x32x128xbf16> to vector<32x128xbf16>
    %cst_45 = arith.constant dense<0.000000e+00> : vector<16x128xf32>
    %102 = tpu.matmul %99, %101, %cst_45 {dimension_numbers = #tpu.dot_dimension_numbers<[1], [0], [0], [1], [0, 0, 1, 1], [], []>} : vector<16x32xbf16>, vector<32x128xbf16>, vector<16x128xf32> -> vector<16x128xf32>
    %c0_46 = arith.constant 0 : index
    %c0_47 = arith.constant 0 : index
    %c0_48 = arith.constant 0 : index
    %103 = vector.load %arg11[%c0_46, %c0_47, %c0_48] : memref<1x1x128xf32, #tpu.memory_space<vmem>>, vector<1x1x128xf32>
    %104 = vector.shape_cast %103 : vector<1x1x128xf32> to vector<1x128xf32>
    %105 = vector.broadcast %104 : vector<1x128xf32> to vector<16x128xf32>
    %106 = arith.addf %102, %105 : vector<16x128xf32>
    %cst_49 = arith.constant 0.000000e+00 : f32
    %107 = vector.broadcast %cst_49 : f32 to vector<16x128xf32>
    %108 = arith.maximumf %106, %107 : vector<16x128xf32>
    %109 = arith.truncf %108 : vector<16x128xf32> to vector<16x128xbf16>
    %c0_50 = arith.constant 0 : index
    %c0_51 = arith.constant 0 : index
    %c0_52 = arith.constant 0 : index
    %110 = vector.load %arg12[%c0_50, %c0_51, %c0_52] : memref<1x128x32xbf16, #tpu.memory_space<vmem>>, vector<1x128x32xbf16>
    %111 = vector.shape_cast %110 : vector<1x128x32xbf16> to vector<128x32xbf16>
    %cst_53 = arith.constant dense<0.000000e+00> : vector<16x32xf32>
    %112 = tpu.matmul %109, %111, %cst_53 {dimension_numbers = #tpu.dot_dimension_numbers<[1], [0], [0], [1], [0, 0, 1, 1], [], []>} : vector<16x128xbf16>, vector<128x32xbf16>, vector<16x32xf32> -> vector<16x32xf32>
    %c0_54 = arith.constant 0 : index
    %c0_55 = arith.constant 0 : index
    %c0_56 = arith.constant 0 : index
    %113 = vector.load %arg13[%c0_54, %c0_55, %c0_56] : memref<1x1x32xf32, #tpu.memory_space<vmem>>, vector<1x1x32xf32>
    %114 = vector.shape_cast %113 : vector<1x1x32xf32> to vector<1x32xf32>
    %115 = vector.broadcast %114 : vector<1x32xf32> to vector<16x32xf32>
    %116 = arith.addf %112, %115 : vector<16x32xf32>
    %117 = arith.addf %98, %116 : vector<16x32xf32>
    %c0_57 = arith.constant 0 : index
    %c0_58 = arith.constant 0 : index
    %c0_59 = arith.constant 0 : index
    %118 = vector.load %arg14[%c0_57, %c0_58, %c0_59] : memref<1x1x32xf32, #tpu.memory_space<vmem>>, vector<1x1x32xf32>
    %119 = vector.shape_cast %118 : vector<1x1x32xf32> to vector<1x32xf32>
    %c0_60 = arith.constant 0 : index
    %c0_61 = arith.constant 0 : index
    %c0_62 = arith.constant 0 : index
    %120 = vector.load %arg15[%c0_60, %c0_61, %c0_62] : memref<1x1x32xf32, #tpu.memory_space<vmem>>, vector<1x1x32xf32>
    %121 = vector.shape_cast %120 : vector<1x1x32xf32> to vector<1x32xf32>
    %cst_63 = arith.constant dense<0.000000e+00> : vector<16xf32>
    %122 = vector.multi_reduction <add>, %117, %cst_63 [1] : vector<16x32xf32> to vector<16xf32>
    %123 = vector.shape_cast %122 : vector<16xf32> to vector<16x1xf32>
    %cst_64 = arith.constant 3.200000e+01 : f32
    %124 = vector.broadcast %cst_64 : f32 to vector<16x1xf32>
    %125 = arith.divf %123, %124 : vector<16x1xf32>
    %126 = vector.broadcast %125 : vector<16x1xf32> to vector<16x32xf32>
    %127 = arith.subf %117, %126 : vector<16x32xf32>
    %128 = arith.mulf %127, %127 : vector<16x32xf32>
    %cst_65 = arith.constant dense<0.000000e+00> : vector<16xf32>
    %129 = vector.multi_reduction <add>, %128, %cst_65 [1] : vector<16x32xf32> to vector<16xf32>
    %130 = vector.shape_cast %129 : vector<16xf32> to vector<16x1xf32>
    %cst_66 = arith.constant 3.200000e+01 : f32
    %131 = vector.broadcast %cst_66 : f32 to vector<16x1xf32>
    %132 = arith.divf %130, %131 : vector<16x1xf32>
    %133 = vector.broadcast %125 : vector<16x1xf32> to vector<16x32xf32>
    %134 = arith.subf %117, %133 : vector<16x32xf32>
    %cst_67 = arith.constant 9.99999974E-6 : f32
    %135 = vector.broadcast %cst_67 : f32 to vector<16x1xf32>
    %136 = arith.addf %132, %135 : vector<16x1xf32>
    %137 = math.rsqrt %136 : vector<16x1xf32>
    %138 = vector.broadcast %137 : vector<16x1xf32> to vector<16x32xf32>
    %139 = arith.mulf %134, %138 : vector<16x32xf32>
    %140 = vector.broadcast %119 : vector<1x32xf32> to vector<16x32xf32>
    %141 = arith.mulf %139, %140 : vector<16x32xf32>
    %142 = vector.broadcast %121 : vector<1x32xf32> to vector<16x32xf32>
    %143 = arith.addf %141, %142 : vector<16x32xf32>
    %c0_68 = arith.constant 0 : index
    %c0_69 = arith.constant 0 : index
    %144 = vector.load %arg16[%c0_68, %c0_69] : memref<16x32xf32, #tpu.memory_space<vmem>>, vector<16x32xf32>
    tpu.vector_store %arg16[%c0_68, %c0_69], %143 {strides = array<i32>} : memref<16x32xf32, #tpu.memory_space<vmem>>, vector<16x32xf32>,
    return
  }
  func.func @transform_0(%arg0: i32, %arg1: i32) -> (i32, i32) {
    %c0_i32 = arith.constant 0 : i32
    %c0_i32_0 = arith.constant 0 : i32
    return %arg0, %c0_i32 : i32, i32
  }
  func.func @transform_1(%arg0: i32, %arg1: i32) -> (i32, i32, i32) {
    %c0_i32 = arith.constant 0 : i32
    %c0_i32_0 = arith.constant 0 : i32
    %c0_i32_1 = arith.constant 0 : i32
    return %arg0, %c0_i32, %c0_i32_0 : i32, i32, i32
  }
  func.func @transform_2(%arg0: i32, %arg1: i32) -> (i32, i32, i32) {
    %c0_i32 = arith.constant 0 : i32
    %c0_i32_0 = arith.constant 0 : i32
    %c0_i32_1 = arith.constant 0 : i32
    return %arg1, %c0_i32, %c0_i32_0 : i32, i32, i32
  }
  func.func @transform_3(%arg0: i32, %arg1: i32) -> (i32, i32, i32) {
    %c0_i32 = arith.constant 0 : i32
    %c0_i32_0 = arith.constant 0 : i32
    %c0_i32_1 = arith.constant 0 : i32
    return %arg1, %c0_i32, %c0_i32_0 : i32, i32, i32
  }
  func.func @transform_4(%arg0: i32, %arg1: i32) -> (i32, i32, i32) {
    %c0_i32 = arith.constant 0 : i32
    %c0_i32_0 = arith.constant 0 : i32
    %c0_i32_1 = arith.constant 0 : i32
    return %arg1, %c0_i32, %c0_i32_0 : i32, i32, i32
  }
  func.func @transform_5(%arg0: i32, %arg1: i32) -> (i32, i32, i32) {
    %c0_i32 = arith.constant 0 : i32
    %c0_i32_0 = arith.constant 0 : i32
    %c0_i32_1 = arith.constant 0 : i32
    return %arg1, %c0_i32, %c0_i32_0 : i32, i32, i32
  }
  func.func @transform_6(%arg0: i32, %arg1: i32) -> (i32, i32, i32) {
    %c0_i32 = arith.constant 0 : i32
    %c0_i32_0 = arith.constant 0 : i32
    %c0_i32_1 = arith.constant 0 : i32
    return %arg1, %c0_i32, %c0_i32_0 : i32, i32, i32
  }
  func.func @transform_7(%arg0: i32, %arg1: i32) -> (i32, i32, i32) {
    %c0_i32 = arith.constant 0 : i32
    %c0_i32_0 = arith.constant 0 : i32
    %c0_i32_1 = arith.constant 0 : i32
    return %arg1, %c0_i32, %c0_i32_0 : i32, i32, i32
  }
  func.func @transform_8(%arg0: i32, %arg1: i32) -> (i32, i32, i32) {
    %c0_i32 = arith.constant 0 : i32
    %c0_i32_0 = arith.constant 0 : i32
    %c0_i32_1 = arith.constant 0 : i32
    return %arg1, %c0_i32, %c0_i32_0 : i32, i32, i32
  }
  func.func @transform_9(%arg0: i32, %arg1: i32) -> (i32, i32, i32) {
    %c0_i32 = arith.constant 0 : i32
    %c0_i32_0 = arith.constant 0 : i32
    %c0_i32_1 = arith.constant 0 : i32
    return %arg1, %c0_i32, %c0_i32_0 : i32, i32, i32
  }
  func.func @transform_10(%arg0: i32, %arg1: i32) -> (i32, i32, i32) {
    %c0_i32 = arith.constant 0 : i32
    %c0_i32_0 = arith.constant 0 : i32
    %c0_i32_1 = arith.constant 0 : i32
    return %arg1, %c0_i32, %c0_i32_0 : i32, i32, i32
  }
  func.func @transform_11(%arg0: i32, %arg1: i32) -> (i32, i32, i32) {
    %c0_i32 = arith.constant 0 : i32
    %c0_i32_0 = arith.constant 0 : i32
    %c0_i32_1 = arith.constant 0 : i32
    return %arg1, %c0_i32, %c0_i32_0 : i32, i32, i32
  }
  func.func @transform_12(%arg0: i32, %arg1: i32) -> (i32, i32, i32) {
    %c0_i32 = arith.constant 0 : i32
    %c0_i32_0 = arith.constant 0 : i32
    %c0_i32_1 = arith.constant 0 : i32
    return %arg1, %c0_i32, %c0_i32_0 : i32, i32, i32
  }
  func.func @transform_13(%arg0: i32, %arg1: i32) -> (i32, i32, i32) {
    %c0_i32 = arith.constant 0 : i32
    %c0_i32_0 = arith.constant 0 : i32
    %c0_i32_1 = arith.constant 0 : i32
    return %arg1, %c0_i32, %c0_i32_0 : i32, i32, i32
  }
  func.func @transform_14(%arg0: i32, %arg1: i32) -> (i32, i32) {
    %c0_i32 = arith.constant 0 : i32
    %c0_i32_0 = arith.constant 0 : i32
    return %arg0, %c0_i32 : i32, i32
  }
}

</mosaic_0001>

<bundles_post_ra>
// kernel: tpu_custom_call.1
= control target key start
LH: loop header
LB: loop body
LE: loop exit
PB: predicated region body
PF: predicated region fallthrough
CT: control target
= control target key end

     0   :  { %s3800_s0 = inlined_call_operand.hbm [shape: f32[16,32], index: 0, kind: input, shape index: {}]   ;;  %s3801_s1 = inlined_call_operand.hbm [shape: f32[2,8,8], index: 1, kind: input, shape index: {}]   ;;  %s3802_s2 = inlined_call_operand.hbm [shape: bf16[4,32,96], index: 2, kind: input, shape index: {}]   ;;  %s3803_s3 = inlined_call_operand.hbm [shape: f32[4,1,96], index: 3, kind: input, shape index: {}]   ;;  %s3804_s4 = inlined_call_operand.hbm [shape: bf16[4,32,32], index: 4, kind: input, shape index: {}]   ;;  %s3805_s5 = inlined_call_operand.hbm [shape: f32[4,1,32], index: 5, kind: input, shape index: {}]   ;;  %s3806_s6 = inlined_call_operand.hbm [shape: f32[4,1,32], index: 6, kind: input, shape index: {}]   ;;  %s3807_s7 = inlined_call_operand.hbm [shape: f32[4,1,32], index: 7, kind: input, shape index: {}]   ;;  %s3808_s8 = inlined_call_operand.hbm [shape: bf16[4,32,128], index: 8, kind: input, shape index: {}]   ;;  %s3809_s9 = inlined_call_operand.hbm [shape: f32[4,1,128], index: 9, kind: input, shape index: {}]   ;;  %s3810_s10 = inlined_call_operand.hbm [shape: bf16[4,128,32], index: 10, kind: input, shape index: {}]   ;;  %s3811_s11 = inlined_call_operand.hbm [shape: f32[4,1,32], index: 11, kind: input, shape index: {}]   ;;  %s3812_s12 = inlined_call_operand.hbm [shape: f32[4,1,32], index: 12, kind: input, shape index: {}]   ;;  %s3813_s13 = inlined_call_operand.hbm [shape: f32[4,1,32], index: 13, kind: input, shape index: {}]   ;;  %s3814_s14 = inlined_call_operand.hbm [shape: f32[16,32], index: 14, kind: output, shape index: {}]  }
   0x1   :  { %3851 = sst [smem:[#allocation35_spill]] %s3800_s0 }
   0x2   :  { %3852 = sst [smem:[#allocation36_spill]] %s3801_s1 }
   0x3   :  { %3853 = sst [smem:[#allocation37_spill]] %s3802_s2 }
   0x4   :  { %3854 = sst [smem:[#allocation38_spill]] %s3803_s3 }
   0x5   :  { %3855 = sst [smem:[#allocation39_spill]] %s3804_s4 }
   0x6   :  { %3856 = sst [smem:[#allocation40_spill]] %s3812_s12 }
   0x7   :  { %3857 = sst [smem:[#allocation41_spill]] %s3813_s13 }
   0x8   :  { %3858 = sst [smem:[#allocation42_spill]] %s3814_s14 }
   0x9   :  { %19 = vsyncpa [#allocation4], 0 }
   0xa   :  { %20 = vsyncpa [#allocation7], 0 }
   0xb   :  { %21 = vsyncpa [#allocation5], 0  ;;  %s3075_s29 = smov 0   ;;  %s3077_s30 = smov 0  }
   0xc   :  { %s3079_s15 = smov 0   ;;  %s3081_s16 = smov 0  }
   0xd   :  { %s3083_s17 = smov 0   ;;  %s3085_s18 = smov 0  }
   0xe LB: > { %3859 = sst [smem:[#allocation25_spill]] %s2953_s30  ;;  %s3104_s19 = sadd.s32 4294967295, %s2969_s18   ;;  %s2969_s18 = sphi %s3085_s18, %s27_s18   ;;  %s2965_s17 = sphi %s3083_s17, %s3922_s17   ;;  %s2961_s16 = sphi %s3081_s16, %s3921_s16   ;;  %s2957_s15 = sphi %s3079_s15, %s3919_s15   ;;  %s2953_s30 = sphi %s3077_s30, %s3918_s30   ;;  %s2949_s29 = sphi %s3075_s29, %s3917_s29  }
   0xf   : > { %3860 = sst [smem:[#allocation26_spill]] %s2957_s15  ;;  %p105_p0 = scmp.ne.s32.totalorder %s2957_s15, %s2953_s30 }
  0x10   : > { %3861 = sst [smem:[#allocation27_spill]] %s2961_s16  ;;  %p106_p1 = scmp.eq.s32.totalorder %s2969_s18, 0 }
  0x11   : > { %3862 = sst [smem:[#allocation28_spill]] %s2969_s18  ;;  %p111_p2 = scmp.ne.s32.totalorder %s2953_s30, %s2949_s29 }
  0x12   : > { %3863 = sst [smem:[#allocation29_spill]] %s3104_s19  ;;  %p3818_p3 = scmp.eq.s32.totalorder %s3104_s19, 0 }
  0x13   : > { %p3112_p4 = por %p106_p1, %p105_p0  ;;  %p2076_p5 = scmp.ge.s32.totalorder %s2969_s18, 1 }
  0x14   : > { %p3119_p6 = por %p3818_p3, %p111_p2  ;;  %p434_p7 = scmp.lt.s32.totalorder %s2969_s18, 5 }
  0x15   : > { %s2971_s24 = smov [#allocation3]   ;;  %p2357_p10 = scmp.lt.s32.totalorder %s2969_s18, 4 }
  0x16   : > { %s3865_s22 = scalar_select %p3119_p6, 1, 0 }
  0x17   : > { %p3124_p8 = pnand %p2076_p5, %p434_p7  ;;  %s449_s25 = sshll.u32 %s2971_s24, 4  ;;  %s3128_s25 = int_to_ptr.vmem [resolvable:$true] %s449_s25 }
  0x18   : > { %3866 = sst [smem:[#allocation30_spill]] %s3865_s22  ;;  %s3141_s28 = sand.u32 1, %s2957_s15  }
  0x19   : > { %s3867_s23 = scalar_select %p3124_p8, 1, 0 }
  0x1a   : > { %p2311_p9 = pneg %p3124_p8  ;;  %p3145_p12 = pnand %p2357_p10, %p3112_p4 }
  0x1b   : > { %3868 = sst [smem:[#allocation31_spill]] %s3867_s23 }
  0x1c   : > { %p3135_p11 = pnand %p2311_p9, %p3818_p3  ;;  %s3872_s0 = sld [smem:[#allocation35_spill]] }
  0x1d   : > { %s3871_s29 = scalar_select %p3145_p12, 1, 0 }
  0x1e   : > { %s3869_s26 = scalar_select %p3135_p11, 1, 0 }
  0x1f   : > { %p3830_p0 = pneg %p3135_p11 }
  0x20   : > { %3870 = sst [smem:[#allocation32_spill]] %s3869_s26 }
  0x22   : > { %s2465_s14 = scalar_lea.hbm %s3872_s0, 256 }
  0x23   : > { %p2466_p13 = scmp.ne.s32.totalorder %s3872_s0, %s2465_s14  ;;  %p2472_p4 = scmp.lt.u32.totalorder %s2465_s14, %s3872_s0 }
  0x25   : > { %p2468_p1 = pnand %p3830_p0, %p2466_p13 }
  0x27   : > { %p2469_p2 = pneg %p2468_p1 }
  0x29   : > { %p2474_p5 = pnand %p2472_p4, %p2469_p2 }
  0x2b   : > { %2477 = shalt.err (!%p2474_p5)
}
  0x2c   : > { %s2478_s20 = scalar_lea.vmem %s3128_s25, 256  ;;  %p2486_p3 = scmp.lt.s32.totalorder %s3128_s25, %s3128_s25 }
  0x2d   : > { %p2479_p7 = scmp.ne.s32.totalorder %s3128_s25, %s2478_s20  ;;  %p2487_p13 = scmp.lt.s32.totalorder %s2478_s20, %s2478_s20 }
  0x2f   : > { %p2481_p9 = pnand %p2479_p7, %p3830_p0  ;;  %p2488_p1 = por %p2487_p13, %p2486_p3 }
  0x31   : > { %p2482_p10 = pneg %p2481_p9 }
  0x33   : > { %p2489_p6 = pnand %p2488_p1, %p2482_p10 }
  0x35   : > { %2492 = shalt.err (!%p2489_p6)
}
  0x36   : > { %s3826_s16 = smov 128   ;;  %s3827_s14 = smov 8  }
  0x37   : > { %2314 = dma.hbm_to_vmem [thread:$0]  (!%p3135_p11), %s3872_s0, 256, %s3128_s25, [#allocation4], %s3826_s16, %s3826_s16, %s3827_s14  }
  0x38   : > { %s3180_s24 = sshll.u32 %s3141_s28, 4  ;;  %s36_s21 = sadd.s32 1, %s2965_s17 }
  0x39   : > { %p37_p3 = scmp.ge.s32.totalorder %s36_s21, 4  ;;  %s3184_s20 = sshll.u32 %s2965_s17, 8 }
  0x3a   : > { %s3873_s2 = sld [smem:[#allocation37_spill]]  ;;  %s483_s13 = scalar_lea.vmem [#allocation8], %s3180_s24 }
  0x3b   : > { %s490_s22 = sshll.u32 %s483_s13, 4  ;;  %s3924_s21 = smov (%p37_p3, %s36_s21), 0  ;;  %s3195_s22 = int_to_ptr.vmem [resolvable:$true] %s490_s22 }
  0x3c   : > { %3874 = sst [smem:[#allocation33_spill]] %s3924_s21  ;;  %s95_s25 = ssub.s32 %s2965_s17, %s3924_s21 }
  0x3d   : > { %p3199_p6 = scmp.eq.s32.totalorder %s95_s25, 0  ;;  %s3876_s16 = sand.u32 1, %s2969_s18  }
  0x3e   : > { %s3205_s30 = scalar_lea.sflag [#allocation4], %s3876_s16  ;;  %p3211_p4 = pneg %p3145_p12 }
  0x3f   : > { %s3875_s27 = scalar_select %p3199_p6, 1, 0 }
  0x40   : > { %s3190_s23 = scalar_lea.hbm %s3873_s2, %s3184_s20  ;;  %s2498_s25 = scalar_lea.hbm %s3873_s2, 1024 }
  0x41   : > { %s2493_s19 = scalar_lea.hbm %s3190_s23, 256  ;;  %p2499_p9 = scmp.lt.u32.totalorder %s3190_s23, %s3873_s2 }
  0x42   : > { %p2494_p2 = scmp.ne.s32.totalorder %s3190_s23, %s2493_s19  ;;  %p2500_p10 = scmp.lt.u32.totalorder %s2498_s25, %s2493_s19 }
  0x43   : > { %s3877_s14 = scalar_select %p3211_p4, 1, 0 }
  0x44   : > { %p2496_p5 = pnand %p3211_p4, %p2494_p2  ;;  %p2501_p13 = por %p2500_p10, %p2499_p9 }
  0x45   : > { %p2502_p1 = scmp.lt.u32.totalorder %s2493_s19, %s3190_s23 }
  0x46   : > { %p2497_p7 = pneg %p2496_p5 }
  0x47   : > { %p2503_p3 = por %p2502_p1, %p2501_p13 }
  0x49   : > { %p2504_p0 = pnand %p2503_p3, %p2497_p7 }
  0x4b   : > { %2507 = shalt.err (!%p2504_p0)
}
  0x4c   : > { %s2508_s16 = scalar_lea.vmem %s3195_s22, 256  ;;  %s2974_s0 = smov [#allocation8]  }
  0x4d   : > { %p2509_p2 = scmp.ne.s32.totalorder %s3195_s22, %s2508_s16  ;;  %s2513_s13 = sshll.u32 %s2974_s0, 4  ;;  %s2514_s13 = int_to_ptr.vmem [resolvable:$false] %s2513_s13 }
  0x4e   : > { %s2515_s1 = scalar_lea.vmem %s2514_s13, 512  ;;  %p2516_p11 = scmp.lt.s32.totalorder %s3195_s22, %s2514_s13 }
  0x4f   : > { %p2511_p5 = pnand %p2509_p2, %p3211_p4  ;;  %p2517_p6 = scmp.lt.s32.totalorder %s2515_s1, %s2508_s16 }
  0x51   : > { %p2512_p8 = pneg %p2511_p5  ;;  %p2518_p9 = por %p2517_p6, %p2516_p11 }
  0x53   : > { %p2519_p10 = pnand %p2518_p9, %p2512_p8 }
  0x55   : > { %2522 = shalt.err (!%p2519_p10)
}
  0x56   : > { %s3838_s21 = smov 64   ;;  %s3842_s19 = smov 4  }
  0x57   : > { %2321 = dma.hbm_to_vmem [thread:$0]  (!%p3145_p12), %s3190_s23, 256, %s3195_s22, %s3205_s30, %s3838_s21, %s3838_s21, %s3842_s19  }
  0x58   : > { %s3878_s25 = sadd.s32 1, %s2957_s15  ;;  %p3879_p8 = scmp.ne.s32.totalorder %s3875_s27, 0 }
  0x59   : > { %s3246_s0 = sshll.u32 %s2965_s17, 4  ;;  %s503_s13 = scalar_lea.vmem [#allocation9], %s3141_s28 }
  0x5a   : > { %s3243_s16 = scalar_select %p3879_p8, %s2957_s15, %s3878_s25  }
  0x5b   : > { %s510_s1 = sshll.u32 %s503_s13, 4  ;;  %s3881_s3 = sld [smem:[#allocation38_spill]]  ;;  %s511_s1 = int_to_ptr.vmem [resolvable:$true] %s510_s1 }
  0x5c   : > { %3880 = sst [smem:[#allocation34_spill]] %s3243_s16 }
  0x61   : > { %s508_s26 = scalar_lea.hbm %s3881_s3, %s3246_s0  ;;  %s2528_s27 = scalar_lea.hbm %s3881_s3, 64 }
  0x62   : > { %s2523_s12 = scalar_lea.hbm %s508_s26, 16  ;;  %p2529_p7 = scmp.lt.u32.totalorder %s508_s26, %s3881_s3 }
  0x63   : > { %p2524_p11 = scmp.ne.s32.totalorder %s508_s26, %s2523_s12  ;;  %p2530_p13 = scmp.lt.u32.totalorder %s2528_s27, %s2523_s12 }
  0x64   : > { %p2532_p3 = scmp.lt.u32.totalorder %s2523_s12, %s508_s26 }
  0x65   : > { %p2526_p0 = pnand %p2524_p11, %p3211_p4  ;;  %p2531_p1 = por %p2530_p13, %p2529_p7 }
  0x67   : > { %p2527_p6 = pneg %p2526_p0  ;;  %p2533_p2 = por %p2532_p3, %p2531_p1 }
  0x69   : > { %p2534_p5 = pnand %p2533_p2, %p2527_p6 }
  0x6b   : > { %2537 = shalt.err (!%p2534_p5)
}
  0x6c   : > { %s2538_s2 = scalar_lea.vmem %s511_s1, 16  ;;  %s2977_s18 = smov [#allocation9]  }
  0x6d   : > { %p2539_p9 = scmp.ne.s32.totalorder %s511_s1, %s2538_s2  ;;  %s2543_s13 = sshll.u32 %s2977_s18, 4  ;;  %s2544_s13 = int_to_ptr.vmem [resolvable:$false] %s2543_s13 }
  0x6e   : > { %s2545_s23 = scalar_lea.vmem %s2544_s13, 32  ;;  %p2546_p11 = scmp.lt.s32.totalorder %s511_s1, %s2544_s13 }
  0x6f   : > { %p2541_p10 = pnand %p2539_p9, %p3211_p4  ;;  %p2547_p0 = scmp.lt.s32.totalorder %s2545_s23, %s2538_s2 }
  0x71   : > { %p2542_p8 = pneg %p2541_p10  ;;  %p2548_p12 = por %p2547_p0, %p2546_p11 }
  0x73   : > { %p2549_p7 = pnand %p2548_p12, %p2542_p8 }
  0x75   : > { %2552 = shalt.err (!%p2549_p7)
}
  0x76   : > { %p3882_p13 = scmp.ne.s32.totalorder %s3871_s29, 0  ;;  %s3883_s4 = sld [smem:[#allocation39_spill]] }
  0x77   : > { %s521_s27 = scalar_lea.vmem [#allocation10], %s3180_s24  ;;  %s3279_s13 = scalar_lea.hbm %s3805_s5, %s3246_s0 }
  0x78   : > { %2324 = dma.hbm_to_vmem [thread:$0]  (!%p3882_p13), %s508_s26, 16, %s511_s1, %s3205_s30  }
  0x79   : > { %s528_s25 = sshll.u32 %s521_s27, 4  ;;  %s3273_s25 = int_to_ptr.vmem [resolvable:$true] %s528_s25 }
  0x7c   : > { %s3270_s22 = scalar_lea.hbm %s3883_s4, %s3184_s20  ;;  %s2558_s12 = scalar_lea.hbm %s3883_s4, 1024 }
  0x7d   : > { %s2553_s23 = scalar_lea.hbm %s3270_s22, 256  ;;  %p2559_p3 = scmp.lt.u32.totalorder %s3270_s22, %s3883_s4 }
  0x7e   : > { %p2554_p12 = scmp.ne.s32.totalorder %s3270_s22, %s2553_s23  ;;  %p2560_p2 = scmp.lt.u32.totalorder %s2558_s12, %s2553_s23 }
  0x7f   : > { %p2562_p9 = scmp.lt.u32.totalorder %s2553_s23, %s3270_s22 }
  0x80   : > { %p2556_p6 = pnand %p2554_p12, %p3211_p4  ;;  %p2561_p5 = por %p2560_p2, %p2559_p3 }
  0x82   : > { %p2557_p1 = pneg %p2556_p6  ;;  %p2563_p10 = por %p2562_p9, %p2561_p5 }
  0x84   : > { %p2564_p8 = pnand %p2563_p10, %p2557_p1 }
  0x86   : > { %2567 = shalt.err (!%p2564_p8)
}
  0x87   : > { %s2568_s27 = scalar_lea.vmem %s3273_s25, 256  ;;  %s2978_s2 = smov [#allocation10]  }
  0x88   : > { %p2569_p11 = scmp.ne.s32.totalorder %s3273_s25, %s2568_s27  ;;  %s2573_s18 = sshll.u32 %s2978_s2, 4  ;;  %s2574_s18 = int_to_ptr.vmem [resolvable:$false] %s2573_s18 }
  0x89   : > { %s2575_s19 = scalar_lea.vmem %s2574_s18, 512  ;;  %p2576_p12 = scmp.lt.s32.totalorder %s3273_s25, %s2574_s18 }
  0x8a   : > { %p2571_p0 = pnand %p2569_p11, %p3211_p4  ;;  %p2577_p6 = scmp.lt.s32.totalorder %s2575_s19, %s2568_s27 }
  0x8c   : > { %p2572_p7 = pneg %p2571_p0  ;;  %p2578_p3 = por %p2577_p6, %p2576_p12 }
  0x8e   : > { %p2579_p2 = pnand %p2578_p3, %p2572_p7 }
  0x90   : > { %2582 = shalt.err (!%p2579_p2)
}
  0x91   : > { %s3884_s23 = smov 4   ;;  %s3885_s26 = smov 64  }
  0x92   : > { %2327 = dma.hbm_to_vmem [thread:$0]  (!%p3882_p13), %s3270_s22, 256, %s3273_s25, %s3205_s30, %s3885_s26, %s3885_s26, %s3884_s23  }
  0x93   : > { %s541_s1 = scalar_lea.vmem [#allocation11], %s3141_s28  ;;  %s3311_s2 = scalar_lea.hbm %s3806_s6, %s3246_s0 }
  0x94   : > { %s548_s12 = sshll.u32 %s541_s1, 4  ;;  %s2583_s18 = scalar_lea.hbm %s3279_s13, 16  ;;  %s549_s12 = int_to_ptr.vmem [resolvable:$true] %s548_s12 }
  0x95   : > { %p2584_p1 = scmp.ne.s32.totalorder %s3279_s13, %s2583_s18  ;;  %s2588_s4 = scalar_lea.hbm %s3805_s5, 64 }
  0x96   : > { %p2589_p10 = scmp.lt.u32.totalorder %s3279_s13, %s3805_s5  ;;  %p2590_p8 = scmp.lt.u32.totalorder %s2588_s4, %s2583_s18 }
  0x97   : > { %p2586_p5 = pnand %p2584_p1, %p3211_p4  ;;  %p2592_p0 = scmp.lt.u32.totalorder %s2583_s18, %s3279_s13 }
  0x98   : > { %p2591_p11 = por %p2590_p8, %p2589_p10 }
  0x99   : > { %p2587_p9 = pneg %p2586_p5 }
  0x9a   : > { %p2593_p7 = por %p2592_p0, %p2591_p11 }
  0x9c   : > { %p2594_p12 = pnand %p2593_p7, %p2587_p9 }
  0x9e   : > { %2597 = shalt.err (!%p2594_p12)
}
  0x9f   : > { %s2598_s22 = scalar_lea.vmem %s549_s12, 16  ;;  %s2979_s25 = smov [#allocation11]  }
  0xa0   : > { %p2599_p6 = scmp.ne.s32.totalorder %s549_s12, %s2598_s22  ;;  %s2603_s1 = sshll.u32 %s2979_s25, 4  ;;  %s2604_s1 = int_to_ptr.vmem [resolvable:$false] %s2603_s1 }
  0xa1   : > { %s2605_s3 = scalar_lea.vmem %s2604_s1, 32  ;;  %p2606_p1 = scmp.lt.s32.totalorder %s549_s12, %s2604_s1 }
  0xa2   : > { %p2601_p3 = pnand %p2599_p6, %p3211_p4  ;;  %p2607_p5 = scmp.lt.s32.totalorder %s2605_s3, %s2598_s22 }
  0xa4   : > { %p2602_p2 = pneg %p2601_p3  ;;  %p2608_p13 = por %p2607_p5, %p2606_p1 }
  0xa6   : > { %p2609_p8 = pnand %p2608_p13, %p2602_p2 }
  0xa8   : > { %2612 = shalt.err (!%p2609_p8)
}
  0xa9   : > { %p3886_p10 = scmp.ne.s32.totalorder %s3871_s29, 0  ;;  %s558_s4 = scalar_lea.vmem [#allocation12], %s3141_s28 }
  0xaa   : > { %s565_s15 = sshll.u32 %s558_s4, 4  ;;  %s3336_s27 = scalar_lea.hbm %s3807_s7, %s3246_s0  ;;  %s566_s15 = int_to_ptr.vmem [resolvable:$true] %s565_s15 }
  0xab   : > { %2330 = dma.hbm_to_vmem [thread:$0]  (!%p3886_p10), %s3279_s13, 16, %s549_s12, %s3205_s30  }
  0xac   : > { %s2613_s18 = scalar_lea.hbm %s3311_s2, 16  ;;  %s2618_s25 = scalar_lea.hbm %s3806_s6, 64 }
  0xad   : > { %p2614_p13 = scmp.ne.s32.totalorder %s3311_s2, %s2613_s18  ;;  %p2619_p0 = scmp.lt.u32.totalorder %s3311_s2, %s3806_s6 }
  0xae   : > { %p2620_p7 = scmp.lt.u32.totalorder %s2618_s25, %s2613_s18  ;;  %p2622_p6 = scmp.lt.u32.totalorder %s2613_s18, %s3311_s2 }
  0xaf   : > { %p2616_p9 = pnand %p2614_p13, %p3211_p4 }
  0xb0   : > { %p2621_p12 = por %p2620_p7, %p2619_p0 }
  0xb1   : > { %p2617_p11 = pneg %p2616_p9 }
  0xb2   : > { %p2623_p3 = por %p2622_p6, %p2621_p12 }
  0xb4   : > { %p2624_p2 = pnand %p2623_p3, %p2617_p11 }
  0xb6   : > { %2627 = shalt.err (!%p2624_p2)
}
  0xb7   : > { %s2628_s13 = scalar_lea.vmem %s566_s15, 16  ;;  %s2980_s12 = smov [#allocation12]  }
  0xb8   : > { %p2629_p1 = scmp.ne.s32.totalorder %s566_s15, %s2628_s13  ;;  %s2633_s4 = sshll.u32 %s2980_s12, 4  ;;  %s2634_s4 = int_to_ptr.vmem [resolvable:$false] %s2633_s4 }
  0xb9   : > { %s2635_s16 = scalar_lea.vmem %s2634_s4, 32  ;;  %p2636_p13 = scmp.lt.s32.totalorder %s566_s15, %s2634_s4 }
  0xba   : > { %p2631_p5 = pnand %p2629_p1, %p3211_p4  ;;  %p2637_p9 = scmp.lt.s32.totalorder %s2635_s16, %s2628_s13 }
  0xbc   : > { %p2632_p8 = pneg %p2631_p5  ;;  %p2638_p10 = por %p2637_p9, %p2636_p13 }
  0xbe   : > { %p2639_p0 = pnand %p2638_p10, %p2632_p8 }
  0xc0   : > { %2642 = shalt.err (!%p2639_p0)
}
  0xc1   : > { %p3887_p7 = scmp.ne.s32.totalorder %s3871_s29, 0  ;;  %s575_s21 = scalar_lea.vmem [#allocation13], %s3141_s28 }
  0xc2   : > { %s582_s18 = sshll.u32 %s575_s21, 4  ;;  %s3361_s25 = scalar_lea.hbm %s3808_s8, %s3184_s20  ;;  %s583_s18 = int_to_ptr.vmem [resolvable:$true] %s582_s18 }
  0xc3   : > { %2333 = dma.hbm_to_vmem [thread:$0]  (!%p3887_p7), %s3311_s2, 16, %s566_s15, %s3205_s30  }
  0xc4   : > { %s2643_s1 = scalar_lea.hbm %s3336_s27, 16  ;;  %s2648_s12 = scalar_lea.hbm %s3807_s7, 64 }
  0xc5   : > { %p2644_p10 = scmp.ne.s32.totalorder %s3336_s27, %s2643_s1  ;;  %p2649_p6 = scmp.lt.u32.totalorder %s3336_s27, %s3807_s7 }
  0xc6   : > { %p2650_p3 = scmp.lt.u32.totalorder %s2648_s12, %s2643_s1  ;;  %p2652_p1 = scmp.lt.u32.totalorder %s2643_s1, %s3336_s27 }
  0xc7   : > { %p2646_p11 = pnand %p2644_p10, %p3211_p4 }
  0xc8   : > { %p2651_p2 = por %p2650_p3, %p2649_p6 }
  0xc9   : > { %p2647_p12 = pneg %p2646_p11 }
  0xca   : > { %p2653_p5 = por %p2652_p1, %p2651_p2 }
  0xcc   : > { %p2654_p8 = pnand %p2653_p5, %p2647_p12 }
  0xce   : > { %2657 = shalt.err (!%p2654_p8)
}
  0xcf   : > { %s2658_s20 = scalar_lea.vmem %s583_s18, 16  ;;  %s2981_s2 = smov [#allocation13]  }
  0xd0   : > { %p2659_p13 = scmp.ne.s32.totalorder %s583_s18, %s2658_s20  ;;  %s2663_s15 = sshll.u32 %s2981_s2, 4  ;;  %s2664_s15 = int_to_ptr.vmem [resolvable:$false] %s2663_s15 }
  0xd1   : > { %s2665_s21 = scalar_lea.vmem %s2664_s15, 32  ;;  %p2666_p10 = scmp.lt.s32.totalorder %s583_s18, %s2664_s15 }
  0xd2   : > { %p2661_p9 = pnand %p2659_p13, %p3211_p4  ;;  %p2667_p11 = scmp.lt.s32.totalorder %s2665_s21, %s2658_s20 }
  0xd4   : > { %p2662_p0 = pneg %p2661_p9  ;;  %p2668_p7 = por %p2667_p11, %p2666_p10 }
  0xd6   : > { %p2669_p3 = pnand %p2668_p7, %p2662_p0 }
  0xd8   : > { %2672 = shalt.err (!%p2669_p3)
}
  0xd9   : > { %p3888_p6 = scmp.ne.s32.totalorder %s3871_s29, 0  ;;  %s593_s19 = scalar_lea.vmem [#allocation14], %s3180_s24 }
  0xda   : > { %s600_s22 = sshll.u32 %s593_s19, 4  ;;  %s3388_s13 = scalar_lea.hbm %s3809_s9, %s3246_s0  ;;  %s3382_s22 = int_to_ptr.vmem [resolvable:$true] %s600_s22 }
  0xdb   : > { %2336 = dma.hbm_to_vmem [thread:$0]  (!%p3888_p6), %s3336_s27, 16, %s583_s18, %s3205_s30  }
  0xdc   : > { %s2673_s12 = scalar_lea.hbm %s3361_s25, 256  ;;  %s2678_s20 = scalar_lea.hbm %s3808_s8, 1024 }
  0xdd   : > { %p2674_p7 = scmp.ne.s32.totalorder %s3361_s25, %s2673_s12  ;;  %p2679_p1 = scmp.lt.u32.totalorder %s3361_s25, %s3808_s8 }
  0xde   : > { %p2680_p5 = scmp.lt.u32.totalorder %s2678_s20, %s2673_s12  ;;  %p2682_p13 = scmp.lt.u32.totalorder %s2673_s12, %s3361_s25 }
  0xdf   : > { %p2676_p12 = pnand %p2674_p7, %p3211_p4 }
  0xe0   : > { %p2681_p8 = por %p2680_p5, %p2679_p1 }
  0xe1   : > { %p2677_p2 = pneg %p2676_p12 }
  0xe2   : > { %p2683_p9 = por %p2682_p13, %p2681_p8 }
  0xe4   : > { %p2684_p0 = pnand %p2683_p9, %p2677_p2 }
  0xe6   : > { %2687 = shalt.err (!%p2684_p0)
}
  0xe7   : > { %s2688_s24 = scalar_lea.vmem %s3382_s22, 256  ;;  %s2982_s18 = smov [#allocation14]  }
  0xe8   : > { %p2689_p10 = scmp.ne.s32.totalorder %s3382_s22, %s2688_s24  ;;  %s2693_s15 = sshll.u32 %s2982_s18, 4  ;;  %s2694_s15 = int_to_ptr.vmem [resolvable:$false] %s2693_s15 }
  0xe9   : > { %s2695_s21 = scalar_lea.vmem %s2694_s15, 512  ;;  %p2696_p7 = scmp.lt.s32.totalorder %s3382_s22, %s2694_s15 }
  0xea   : > { %p2691_p11 = pnand %p2689_p10, %p3211_p4  ;;  %p2697_p12 = scmp.lt.s32.totalorder %s2695_s21, %s2688_s24 }
  0xec   : > { %p2692_p3 = pneg %p2691_p11  ;;  %p2698_p1 = por %p2697_p12, %p2696_p7 }
  0xee   : > { %p2699_p5 = pnand %p2698_p1, %p2692_p3 }
  0xf0   : > { %2702 = shalt.err (!%p2699_p5)
}
  0xf1   : > { %2339 = dma.hbm_to_vmem [thread:$0]  (!%p3888_p6), %s3361_s25, 256, %s3382_s22, %s3205_s30, %s3885_s26, %s3885_s26, %s3884_s23  }
  0xf2   : > { %s613_s19 = scalar_lea.vmem [#allocation15], %s3141_s28  ;;  %s2094_s3 = sshll.u32 %s3141_s28, 6 }
  0xf3   : > { %s620_s1 = sshll.u32 %s613_s19, 4  ;;  %s2703_s12 = scalar_lea.hbm %s3388_s13, 16  ;;  %s621_s1 = int_to_ptr.vmem [resolvable:$true] %s620_s1 }
  0xf4   : > { %p2704_p2 = scmp.ne.s32.totalorder %s3388_s13, %s2703_s12  ;;  %s2708_s20 = scalar_lea.hbm %s3809_s9, 64 }
  0xf5   : > { %p2709_p9 = scmp.lt.u32.totalorder %s3388_s13, %s3809_s9  ;;  %p2710_p0 = scmp.lt.u32.totalorder %s2708_s20, %s2703_s12 }
  0xf6   : > { %p2706_p8 = pnand %p2704_p2, %p3211_p4  ;;  %p2712_p11 = scmp.lt.u32.totalorder %s2703_s12, %s3388_s13 }
  0xf7   : > { %p2711_p10 = por %p2710_p0, %p2709_p9 }
  0xf8   : > { %p2707_p13 = pneg %p2706_p8 }
  0xf9   : > { %p2713_p3 = por %p2712_p11, %p2711_p10 }
  0xfb   : > { %p2714_p7 = pnand %p2713_p3, %p2707_p13 }
  0xfd   : > { %2717 = shalt.err (!%p2714_p7)
}
  0xfe   : > { %s2718_s25 = scalar_lea.vmem %s621_s1, 16  ;;  %s2983_s22 = smov [#allocation15]  }
  0xff   : > { %p2719_p12 = scmp.ne.s32.totalorder %s621_s1, %s2718_s25  ;;  %s2723_s24 = sshll.u32 %s2983_s22, 4  ;;  %s2724_s24 = int_to_ptr.vmem [resolvable:$false] %s2723_s24 }
 0x100   : > { %s2725_s18 = scalar_lea.vmem %s2724_s24, 32  ;;  %p2726_p2 = scmp.lt.s32.totalorder %s621_s1, %s2724_s24 }
 0x101   : > { %p2721_p1 = pnand %p2719_p12, %p3211_p4  ;;  %p2727_p8 = scmp.lt.s32.totalorder %s2725_s18, %s2718_s25 }
 0x103   : > { %p2722_p5 = pneg %p2721_p1  ;;  %p2728_p6 = por %p2727_p8, %p2726_p2 }
 0x105   : > { %p2729_p0 = pnand %p2728_p6, %p2722_p5 }
 0x107   : > { %2732 = shalt.err (!%p2729_p0)
}
 0x108   : > { %p3889_p9 = scmp.ne.s32.totalorder %s3871_s29, 0  ;;  %s2148_s15 = sshll.u32 %s2965_s17, 10 }
 0x109   : > { %s631_s21 = scalar_lea.vmem [#allocation16], %s2094_s3  ;;  %s3441_s16 = scalar_lea.hbm %s3810_s10, %s2148_s15 }
 0x10a   : > { %2342 = dma.hbm_to_vmem [thread:$0]  (!%p3889_p9), %s3388_s13, 16, %s621_s1, %s3205_s30  }
 0x10b   : > { %s638_s19 = sshll.u32 %s631_s21, 4  ;;  %s2733_s20 = scalar_lea.hbm %s3441_s16, 1024  ;;  %s3443_s19 = int_to_ptr.vmem [resolvable:$true] %s638_s19 }
 0x10c   : > { %p2734_p6 = scmp.ne.s32.totalorder %s3441_s16, %s2733_s20  ;;  %s2738_s3 = scalar_lea.hbm %s3810_s10, 4096 }
 0x10d   : > { %p2739_p11 = scmp.lt.u32.totalorder %s3441_s16, %s3810_s10  ;;  %p2740_p3 = scmp.lt.u32.totalorder %s2738_s3, %s2733_s20 }
 0x10e   : > { %p2736_p13 = pnand %p2734_p6, %p3211_p4  ;;  %p2742_p12 = scmp.lt.u32.totalorder %s2733_s20, %s3441_s16 }
 0x10f   : > { %p2741_p7 = por %p2740_p3, %p2739_p11 }
 0x110   : > { %p2737_p10 = pneg %p2736_p13 }
 0x111   : > { %p2743_p1 = por %p2742_p12, %p2741_p7 }
 0x113   : > { %p2744_p5 = pnand %p2743_p1, %p2737_p10 }
 0x115   : > { %2747 = shalt.err (!%p2744_p5)
}
 0x116   : > { %s2748_s25 = scalar_lea.vmem %s3443_s19, 1024  ;;  %s2984_s22 = smov [#allocation16]  }
 0x117   : > { %p2749_p2 = scmp.ne.s32.totalorder %s3443_s19, %s2748_s25  ;;  %s2753_s24 = sshll.u32 %s2984_s22, 4  ;;  %s2754_s24 = int_to_ptr.vmem [resolvable:$false] %s2753_s24 }
 0x118   : > { %s2755_s18 = scalar_lea.vmem %s2754_s24, 2048  ;;  %p2756_p6 = scmp.lt.s32.totalorder %s3443_s19, %s2754_s24 }
 0x119   : > { %p2751_p8 = pnand %p2749_p2, %p3211_p4  ;;  %p2757_p13 = scmp.lt.s32.totalorder %s2755_s18, %s2748_s25 }
 0x11b   : > { %p2752_p0 = pneg %p2751_p8  ;;  %p2758_p11 = por %p2757_p13, %p2756_p6 }
 0x11d   : > { %p2759_p3 = pnand %p2758_p11, %p2752_p0 }
 0x11f   : > { %2762 = shalt.err (!%p2759_p3)
}
 0x120   : > { %2345 = dma.hbm_to_vmem [thread:$0]  (!%p3889_p9), %s3441_s16, 1024, %s3443_s19, %s3205_s30, %s3885_s26, %s3885_s26, %s3884_s23  }
 0x121   : > { %s3474_s12 = scalar_lea.hbm %s3811_s11, %s3246_s0  ;;  %s651_s4 = scalar_lea.vmem [#allocation17], %s3141_s28 }
 0x122   : > { %s658_s20 = sshll.u32 %s651_s4, 4  ;;  %s3890_s3 = sld [smem:[#allocation40_spill]]  ;;  %s659_s20 = int_to_ptr.vmem [resolvable:$true] %s658_s20 }
 0x123   : > { %s2763_s27 = scalar_lea.hbm %s3474_s12, 16  ;;  %s2768_s19 = scalar_lea.hbm %s3811_s11, 64 }
 0x124   : > { %p2764_p10 = scmp.ne.s32.totalorder %s3474_s12, %s2763_s27  ;;  %p2769_p1 = scmp.lt.u32.totalorder %s3474_s12, %s3811_s11 }
 0x125   : > { %p2770_p5 = scmp.lt.u32.totalorder %s2768_s19, %s2763_s27  ;;  %p2772_p8 = scmp.lt.u32.totalorder %s2763_s27, %s3474_s12 }
 0x126   : > { %p2766_p7 = pnand %p2764_p10, %p3211_p4 }
 0x127   : > { %p2771_p2 = por %p2770_p5, %p2769_p1 }
 0x128   : > { %s3481_s2 = scalar_lea.hbm %s3890_s3, %s3246_s0  ;;  %p2767_p12 = pneg %p2766_p7 }
 0x129   : > { %p2773_p0 = por %p2772_p8, %p2771_p2 }
 0x12b   : > { %p2774_p6 = pnand %p2773_p0, %p2767_p12 }
 0x12d   : > { %2777 = shalt.err (!%p2774_p6)
}
 0x12e   : > { %s2778_s22 = scalar_lea.vmem %s659_s20, 16  ;;  %s2985_s24 = smov [#allocation17]  }
 0x12f   : > { %p2779_p13 = scmp.ne.s32.totalorder %s659_s20, %s2778_s22  ;;  %s2783_s18 = sshll.u32 %s2985_s24, 4  ;;  %s2784_s18 = int_to_ptr.vmem [resolvable:$false] %s2783_s18 }
 0x130   : > { %s2785_s15 = scalar_lea.vmem %s2784_s18, 32  ;;  %p2786_p10 = scmp.lt.s32.totalorder %s659_s20, %s2784_s18 }
 0x131   : > { %p2781_p11 = pnand %p2779_p13, %p3211_p4  ;;  %p2787_p7 = scmp.lt.s32.totalorder %s2785_s15, %s2778_s22 }
 0x133   : > { %p2782_p3 = pneg %p2781_p11  ;;  %p2788_p9 = por %p2787_p7, %p2786_p10 }
 0x135   : > { %p2789_p1 = pnand %p2788_p9, %p2782_p3 }
 0x137   : > { %2792 = shalt.err (!%p2789_p1)
}
 0x138   : > { %p3891_p5 = scmp.ne.s32.totalorder %s3871_s29, 0  ;;  %s668_s21 = scalar_lea.vmem [#allocation18], %s3141_s28 }
 0x139   : > { %s675_s4 = sshll.u32 %s668_s21, 4  ;;  %s2986_s13 = smov [#allocation6]   ;;  %s3502_s4 = int_to_ptr.vmem [resolvable:$true] %s675_s4 }
 0x13a   : > { %2348 = dma.hbm_to_vmem [thread:$0]  (!%p3891_p5), %s3474_s12, 16, %s659_s20, %s3205_s30  }
 0x13b   : > { %s465_s1 = sshll.u32 %s2986_s13, 4  ;;  %s2793_s27 = scalar_lea.hbm %s3481_s2, 16  ;;  %s466_s1 = int_to_ptr.vmem [resolvable:$true] %s465_s1 }
 0x13c   : > { %p2794_p9 = scmp.ne.s32.totalorder %s3481_s2, %s2793_s27  ;;  %s2798_s19 = scalar_lea.hbm %s3890_s3, 64 }
 0x13d   : > { %p2799_p8 = scmp.lt.u32.totalorder %s3481_s2, %s3890_s3  ;;  %p2800_p0 = scmp.lt.u32.totalorder %s2798_s19, %s2793_s27 }
 0x13e   : > { %p2796_p12 = pnand %p2794_p9, %p3211_p4  ;;  %p2802_p13 = scmp.lt.u32.totalorder %s2793_s27, %s3481_s2 }
 0x13f   : > { %p2801_p6 = por %p2800_p0, %p2799_p8 }
 0x140   : > { %p2797_p2 = pneg %p2796_p12 }
 0x141   : > { %p2803_p11 = por %p2802_p13, %p2801_p6 }
 0x143   : > { %p2804_p3 = pnand %p2803_p11, %p2797_p2 }
 0x145   : > { %2807 = shalt.err (!%p2804_p3)
}
 0x146   : > { %s2808_s12 = scalar_lea.vmem %s3502_s4, 16  ;;  %s2987_s20 = smov [#allocation18]  }
 0x147   : > { %p2809_p10 = scmp.ne.s32.totalorder %s3502_s4, %s2808_s12  ;;  %s2813_s22 = sshll.u32 %s2987_s20, 4  ;;  %s2814_s22 = int_to_ptr.vmem [resolvable:$false] %s2813_s22 }
 0x148   : > { %s2815_s24 = scalar_lea.vmem %s2814_s22, 32  ;;  %p2816_p9 = scmp.lt.s32.totalorder %s3502_s4, %s2814_s22 }
 0x149   : > { %p2811_p7 = pnand %p2809_p10, %p3211_p4  ;;  %p2817_p12 = scmp.lt.s32.totalorder %s2815_s24, %s2808_s12 }
 0x14b   : > { %p2812_p1 = pneg %p2811_p7  ;;  %p2818_p8 = por %p2817_p12, %p2816_p9 }
 0x14d   : > { %p2819_p0 = pnand %p2818_p8, %p2812_p1 }
 0x14f   : > { %2822 = shalt.err (!%p2819_p0)
}
 0x150   : > { %s3892_s18 = sld [smem:[#allocation32_spill]] }
 0x151   : > { %2351 = dma.hbm_to_vmem [thread:$0]  (!%p3891_p5), %s3481_s2, 16, %s3502_s4, %s3205_s30  }
 0x152   : > { %s3893_s13 = sld [smem:[#allocation36_spill]] }
 0x156   : > { %p3894_p6 = scmp.ne.s32.totalorder %s3892_s18, 0 }
 0x158   : > { %s2823_s27 = scalar_lea.hbm %s3893_s13, 256  ;;  %p3895_p13 = pneg %p3894_p6 }
 0x159   : > { %p2824_p2 = scmp.ne.s32.totalorder %s3893_s13, %s2823_s27  ;;  %p2830_p10 = scmp.lt.u32.totalorder %s2823_s27, %s3893_s13 }
 0x15b   : > { %p2826_p11 = pnand %p2824_p2, %p3895_p13 }
 0x15d   : > { %p2827_p3 = pneg %p2826_p11 }
 0x15f   : > { %p2832_p7 = pnand %p2830_p10, %p2827_p3 }
 0x161   : > { %2835 = shalt.err (!%p2832_p7)
}
 0x162   : > { %s2836_s2 = scalar_lea.vmem %s466_s1, 256  ;;  %p3896_p9 = pmov %p3895_p13 }
 0x163   : > { %p2837_p1 = scmp.ne.s32.totalorder %s466_s1, %s2836_s2  ;;  %p2844_p0 = scmp.lt.s32.totalorder %s466_s1, %s466_s1 }
 0x164   : > { %p2845_p5 = scmp.lt.s32.totalorder %s2836_s2, %s2836_s2 }
 0x165   : > { %p2839_p12 = pnand %p2837_p1, %p3896_p9 }
 0x166   : > { %p2846_p4 = por %p2845_p5, %p2844_p0 }
 0x167   : > { %p2840_p8 = pneg %p2839_p12 }
 0x169   : > { %p2847_p2 = pnand %p2846_p4, %p2840_p8 }
 0x16b   : > { %2850 = shalt.err (!%p2847_p2)
}
 0x16c   : > { %s3897_s4 = smov 8   ;;  %s3898_s25 = smov 128  }
 0x16d   : > { %2317 = dma.hbm_to_vmem [thread:$0]  (!%p3894_p6), %s3893_s13, 256, %s466_s1, [#allocation7], %s3898_s25, %s3898_s25, %s3897_s4  }
 0x16e   : > { %s3899_s15 = sld [smem:[#allocation41_spill]]  ;;  %s685_s18 = scalar_lea.vmem [#allocation19], %s3141_s28 }
 0x16f   : > { %s692_s23 = sshll.u32 %s685_s18, 4  ;;  %p3901_p5 = scmp.ne.s32.totalorder %s3877_s14, 0  ;;  %s693_s23 = int_to_ptr.vmem [resolvable:$true] %s692_s23 }
 0x174   : > { %s3900_s21 = smov %s3899_s15  ;;  %s3553_s27 = scalar_lea.hbm %s3899_s15, %s3246_s0 }
 0x175   : > { %s2851_s26 = scalar_lea.hbm %s3553_s27, 16  ;;  %s2856_s1 = scalar_lea.hbm %s3900_s21, 64 }
 0x176   : > { %p2852_p4 = scmp.ne.s32.totalorder %s3553_s27, %s2851_s26  ;;  %p2857_p6 = scmp.lt.u32.totalorder %s3553_s27, %s3900_s21 }
 0x177   : > { %p2858_p3 = scmp.lt.u32.totalorder %s2856_s1, %s2851_s26  ;;  %p2860_p7 = scmp.lt.u32.totalorder %s2851_s26, %s3553_s27 }
 0x178   : > { %p2854_p13 = pnand %p2852_p4, %p3901_p5 }
 0x179   : > { %p2859_p10 = por %p2858_p3, %p2857_p6 }
 0x17a   : > { %p2855_p11 = pneg %p2854_p13 }
 0x17b   : > { %p2861_p1 = por %p2860_p7, %p2859_p10 }
 0x17d   : > { %p2862_p9 = pnand %p2861_p1, %p2855_p11 }
 0x17f   : > { %2865 = shalt.err (!%p2862_p9)
}
 0x180   : > { %s2866_s28 = scalar_lea.vmem %s693_s23, 16  ;;  %s2988_s0 = smov [#allocation19]  }
 0x181   : > { %p2867_p12 = scmp.ne.s32.totalorder %s693_s23, %s2866_s28  ;;  %s2871_s25 = sshll.u32 %s2988_s0, 4  ;;  %s2872_s25 = int_to_ptr.vmem [resolvable:$false] %s2871_s25 }
 0x182   : > { %s2873_s12 = scalar_lea.vmem %s2872_s25, 32  ;;  %p2874_p2 = scmp.lt.s32.totalorder %s693_s23, %s2872_s25 }
 0x183   : > { %p2869_p8 = pnand %p2867_p12, %p3901_p5  ;;  %p2875_p4 = scmp.lt.s32.totalorder %s2873_s12, %s2866_s28 }
 0x185   : > { %p2870_p0 = pneg %p2869_p8  ;;  %p2876_p13 = por %p2875_p4, %p2874_p2 }
 0x187   : > { %p2877_p3 = pnand %p2876_p13, %p2870_p0 }
 0x189   : > { %2880 = shalt.err (!%p2877_p3)
}
 0x18a   : > { %p3902_p6 = scmp.ne.s32.totalorder %s3871_s29, 0  ;;  %s3903_s20 = sld [smem:[#allocation31_spill]] }
 0x18c   : > { %2354 = dma.hbm_to_vmem [thread:$0]  (!%p3902_p6), %s3553_s27, 16, %s693_s23, %s3205_s30  }
 0x190   : > { %p3904_p11 = scmp.ne.s32.totalorder %s3903_s20, 0 }
 0x191   : > { %s3905_s14 = sld [smem:[#allocation29_spill]] (!%p3904_p11) }
 0x192   : > { %701 = sbr.rel (%p3904_p11) target bundleno = 3513 (0xdb9), region = 76 }
 0x197   : > { %p3906_p5 = scmp.eq.s32.totalorder (!%p3904_p11), %s3905_s14, 0 }
 0x199   : > { %2932 = dma.done.wait (%p3906_p5), [#allocation4], 256   ;;  %p3907_p10 = pmov %p3906_p5 }
 0x19a   : > { %p3908_p7 = pmov %p3906_p5 }
 0x19b   : > { %2934 = vsyncadd (%p3907_p10), [#allocation4], 4294967040 }
 0x19c   : > { %2936 = dma.done.wait (%p3908_p7), [#allocation7], 256   ;;  %p3909_p1 = pmov %p3906_p5 }
 0x19d   : > { %s3910_s29 = sld [smem:[#allocation25_spill]]  ;;  %s3911_s22 = sld [smem:[#allocation30_spill]] }
 0x19e   : > { %2938 = vsyncadd (%p3909_p1), [#allocation7], 4294967040  ;;  %s711_s24 = sand.u32 1, %s3905_s14  }
 0x19f   : > { %s712_s27 = scalar_lea.sflag [#allocation4], %s711_s24 }
 0x1a3   : > { %s3586_s30 = sand.u32 1, %s3910_s29   ;;  %p3912_p9 = scmp.ne.s32.totalorder %s3911_s22, 0 }
 0x1a4   : > { %s3589_s15 = sshll.u32 %s3586_s30, 4 }
 0x1a5   : > { %s715_s18 = scalar_lea.vmem [#allocation8], %s3589_s15 }
 0x1a6   : > { %2940 = dma.done.wait (%p3912_p9), %s712_s27, 1920  }
 0x1a7   : > { %2942 = vsyncadd (%p3912_p9), %s712_s27, 4294965376  ;;  %s2106_s23 = sshll.u32 %s3586_s30, 6  ;;  %s723_s26 = scalar_lea.vmem [#allocation9], %s3586_s30 }
 0x1a8   : > { %s732_s19 = scalar_lea.vmem [#allocation10], %s3589_s15  ;;  %s740_s16 = scalar_lea.vmem [#allocation11], %s3586_s30 }
 0x1a9   : > { %s748_s1 = scalar_lea.vmem [#allocation12], %s3586_s30  ;;  %s756_s2 = scalar_lea.vmem [#allocation13], %s3586_s30 }
 0x1aa   : > { %s765_s4 = scalar_lea.vmem [#allocation14], %s3589_s15  ;;  %s773_s28 = scalar_lea.vmem [#allocation15], %s3586_s30 }
 0x1ab   : > { %s3604_s0 = scalar_lea.vmem [#allocation16], %s2106_s23  ;;  %s790_s25 = scalar_lea.vmem [#allocation17], %s3586_s30 }
 0x1ac   : > { %s798_s12 = scalar_lea.vmem [#allocation18], %s3586_s30  ;;  %s806_s20 = scalar_lea.vmem [#allocation19], %s3586_s30 }
 0x1ad   : > { %s3913_s14 = sld [smem:[#allocation27_spill]] }
 0x1b3   : > { %p2107_p12 = scmp.ne.s32.totalorder %s3913_s14, 0 }
 0x1b4   : > { %v901_v0 = vld [vmem:[#allocation3] sm:$0xff] (!%p2107_p12)  ;;  %vm903_vm0 = vcmask (!%p2107_p12), 261120   ;;  %v902_v1 = vld [vmem:[#allocation3 + $0x8] sm:$0xff] (!%p2107_p12) }
 0x1b5   : > { %900 = sbr.rel (%p2107_p12) target bundleno = 444 (0x1bc), region = 136  ;;  %904 = vst.msk [vmem:[#allocation20] sm:$0xff] (!%p2107_p12), %vm903_vm0, %v901_v0  ;;  %905 = vst.msk [vmem:[#allocation20 + $0x8] sm:$0xff] (!%p2107_p12), %vm903_vm0, %v902_v1 }
 0x1bc PF: > { %v2427_v2 = vld [vmem:[%s715_s18] sm:$0xff]   ;;  %v2989_v3 = vmov 0.0   ;;  %v2428_v4 = vld [vmem:[%s715_s18 + $0x8] sm:$0xff]   ;;  %vm2990_vm1 = vmmov 0   ;;  %vm932_vm2 = vcmask 261120   ;;  %s2991_s29 = smov 96  }
 0x1bd   : > { %2183 = vmatprep.subr.bf16.mxu0 %v2989_v3  ;;  %2203 = vmatprep.subr.bf16.mxu1 %v2989_v3  ;;  %v3614_v5 = vld [vmem:[#allocation20] sm:$0xff]  ;;  %v3616_v6 = vld [vmem:[#allocation20 + $0x8] sm:$0xff]  ;;  %vm984_vm3 = vcmask 130048   ;;  %vm1080_vm4 = vcmask 64512   ;;  %s2992_s22 = smov 64   ;;  %s2993_s24 = smov 80  }
 0x1be   : > { %2184 = vmatpush3.bf16.msra.mxu0 %v2427_v2  ;;  %2187 = vmatprep.mubr.msk.bf16.mxu0 %vm2990_vm1, %v2989_v3  ;;  %v908_v7 = vpack.c.bf16 %v3616_v6, %v3614_v5  ;;  %v2108_v8 = vld [vmem:[%s723_s26] ss:$0 sm:$0xff]  ;;  %v3651_v28 = vld [vmem:[#allocation6 + $0x8] sm:$0xff]  ;;  %vm1110_vm5 = vcmask 1043456   ;;  %s2994_s27 = smov 112   ;;  %s2995_s18 = smov 48  }
 0x1bf   : > { %2185 = vmatprep.subr.bf16.mxu0 %v2989_v3  ;;  %2205 = vmatprep.mubr.msk.bf16.mxu1 %vm2990_vm1, %v2989_v3  ;;  %v3647_v21 = vld [vmem:[#allocation6] sm:$0xff]  ;;  %s2996_s23 = smov 16   ;;  %vm1432_vm6 = vcmask 261248   ;;  %s3914_s15 = sld [smem:[#allocation29_spill]] }
 0x1c0   : > { %s2997_s26 = smov [#allocation20]  }
 0x1c2   : > { %2186 = vmatpush3.bf16.msra.mxu0 %v2428_v4 }
 0x1c3   : > { %2191 = vmatprep.subr.bf16.mxu0 %v2989_v3 }
 0x1c5   : > { %2188 = vmatmul.mubr.msk.bf16.vlgmr.msra.gmra.mrb[0].mxu0 %vm932_vm2, %v908_v7  ;;  %p2360_p8 = scmp.eq.s32.totalorder %s3914_s15, 3 }
 0x1c6   : > { %2193 = vmatprep.mubr.msk.bf16.mxu0 %vm2990_vm1, %v2989_v3 }
 0x298   : > { %v970_v9 = vpop.f32.mrb[0].mxu0 }
 0x299   : > { %v971_v10 = vadd.f32 %v2108_v8, %v970_v9  ;;  %v2189_v11 = vpop.f32.mrb[1].mxu0 }
 0x29a   : > { %v973_v12 = vpop.f32.mrb[2].mxu0 }
 0x29b   : > { %v3629_v13 = vpack.c.bf16 %v971_v10, %v971_v10  ;;  %v974_v14 = vadd.f32 %v2108_v8, %v973_v12  ;;  %v2190_v15 = vpop.f32.mrb[3].mxu0 }
 0x29d   : > { %982 = vrot.lane.b32.xlu0 %v3629_v13, %s2991_s29  ;;  %v3632_v16 = vpack.c.bf16 %v974_v14, %v974_v14 }
 0x2a1   : > { %1032 = vrot.lane.b32.xlu0 %v3632_v16, %s2991_s29 }
 0x30f   : > { %v983_v17 = vpop.permute.xlu0 %982 }
 0x310   : > { %v989_v18 = vsel %vm984_vm3, %v983_v17, 0 }
 0x311   : > { %2192 = vmatpush3.bf16.xpose.msra.mxu0 %v989_v18 }
 0x312   : > { %2197 = vmatprep.subr.bf16.mxu0 %v2989_v3 }
 0x313   : > { %v1033_v19 = vpop.permute.xlu0 %1032 }
 0x314   : > { %v1038_v20 = vsel %vm984_vm3, %v1033_v19, 0 }
 0x318   : > { %2194 = vmatmul.mubr.msk.bf16.vlgmr.msra.gmra.mrb[4].mxu0 %vm984_vm3, %v3629_v13 }
 0x319   : > { %2198 = vmatpush3.bf16.xpose.msra.mxu0 %v1038_v20  ;;  %2199 = vmatprep.mubr.msk.bf16.mxu0 %vm2990_vm1, %v2989_v3 }
 0x31a   : > { %2209 = vmatprep.subr.bf16.mxu0 %v2989_v3 }
 0x320   : > { %2200 = vmatmul.mubr.msk.bf16.vlgmr.msra.gmra.mrb[8].mxu0 %vm984_vm3, %v3632_v16 }
 0x321   : > { %2211 = vmatprep.mubr.msk.bf16.mxu0 %vm2990_vm1, %v2989_v3 }
 0x3eb   : > { %v1025_v22 = vpop.f32.mrb[4].mxu0 }
 0x3ec   : > { %v1026_v23 = vadd.f32 %v1025_v22, %v3647_v21  ;;  %v2195_v24 = vpop.f32.mrb[5].mxu0 }
 0x3ed   : > { %v1028_v25 = vpop.f32.mrb[6].mxu0 }
 0x3ee   : > { %v2196_v26 = vpop.f32.mrb[7].mxu0  ;;  %v1081_v27 = vsel %vm1080_vm4, %v1026_v23, -inf }
 0x3ef   : > { %1082 = vmax.xlane.f32.xlu1 %v1081_v27 }
 0x3f3   : > { %v1074_v29 = vpop.f32.mrb[8].mxu0 }
 0x3f4   : > { %v1075_v30 = vadd.f32 %v1074_v29, %v3651_v28  ;;  %v2201_v31 = vpop.f32.mrb[9].mxu0 }
 0x3f5   : > { %v1077_v32 = vpop.f32.mrb[10].mxu0 }
 0x3f6   : > { %v2202_v33 = vpop.f32.mrb[11].mxu0  ;;  %v1084_v34 = vsel %vm1080_vm4, %v1075_v30, -inf }
 0x3f7   : > { %1085 = vmax.xlane.f32.xlu1 %v1084_v34 }
 0x408   : > { %1105 = vrot.lane.b32.xlu1 %v3629_v13, %s2992_s22 }
 0x40c   : > { %1154 = vrot.lane.b32.xlu1 %v3632_v16, %s2992_s22 }
 0x410   : > { %1206 = vrot.lane.b32.xlu1 %v3629_v13, %s2993_s24 }
 0x47c   : > { %v1083_v35 = vpop.xlane.xlu1 %1082 }
 0x47d   : > { %v1087_v36 = vsub.f32 %v1026_v23, %v1083_v35 }
 0x47f   : > { %v1089_v37 = vmul.f32 1.442695, %v1087_v36 }
 0x481   : > { %2441 = vpow2.f32 %v1089_v37 }
 0x484   : > { %v1086_v38 = vpop.xlane.xlu1 %1085 }
 0x485   : > { %v1088_v39 = vsub.f32 %v1075_v30, %v1086_v38 }
 0x487   : > { %v1091_v40 = vmul.f32 1.442695, %v1088_v39 }
 0x488   : > { %v1106_v41 = vpop.permute.xlu1 %1105 }
 0x489   : > { %2443 = vpow2.f32 %v1091_v40  ;;  %v1112_v42 = vsel %vm1110_vm5, %v1106_v41, 0 }
 0x48a   : > { %2204 = vmatpush3.bf16.msra.mxu1 %v1112_v42 }
 0x48b   : > { %v2442_v43 = vpop.eup %2441  ;;  %2215 = vmatprep.subr.bf16.mxu1 %v2989_v3 }
 0x48c   : > { %v1155_v44 = vpop.permute.xlu1 %1154  ;;  %v1093_v45 = vsel %vm1080_vm4, %v2442_v43, 0.0 }
 0x48d   : > { %v1160_v46 = vsel %vm1110_vm5, %v1155_v44, 0  ;;  %1094 = vadd.xlane.f32.xlu0 %v1093_v45  ;;  %v2429_v44 = vld [vmem:[%s732_s19] sm:$0xff]   ;;  %v2430_v45 = vld [vmem:[%s732_s19 + $0x8] sm:$0xff]   ;;  %s1792_s19 = sshll.u32 %s2997_s26, 4  ;;  %s1793_s19 = int_to_ptr.vmem [resolvable:$true] %s1792_s19 }
 0x48e   : > { %2210 = vmatpush3.bf16.msra.mxu0 %v1160_v46  ;;  %p2888_p13 = scmp.lt.s32.totalorder %s1793_s19, %s1793_s19 }
 0x48f   : > { %2221 = vmatprep.subr.bf16.mxu0 %v2989_v3 }
 0x490   : > { %v1207_v50 = vpop.permute.xlu1 %1206 }
 0x491   : > { %v1212_v55 = vsel %vm984_vm3, %v1207_v50, 0 }
 0x493   : > { %v2444_v47 = vpop.eup %2443 }
 0x494   : > { %v1096_v48 = vsel %vm1080_vm4, %v2444_v47, 0.0 }
 0x495   : > { %1097 = vadd.xlane.f32.xlu1 %v1096_v48 }
 0x4a3   : > { %1204 = vrot.lane.b32.xlu0 %v3629_v13, %s2994_s27 }
 0x4a6   : > { %1256 = vrot.lane.b32.xlu1 %v3632_v16, %s2993_s24 }
 0x4aa   : > { %1254 = vrot.lane.b32.xlu1 %v3632_v16, %s2994_s27 }
 0x51a   : > { %v1095_v49 = vpop.xlane.xlu0 %1094 }
 0x51b   : > { %2445 = vrcp.f32 %v1095_v49 }
 0x51e   : > { %v1205_v60 = vpop.permute.xlu0 %1204 }
 0x522   : > { %v1098_v51 = vpop.xlane.xlu1 %1097 }
 0x523   : > { %2447 = vrcp.f32 %v1098_v51 }
 0x525   : > { %v2446_v52 = vpop.eup %2445 }
 0x526   : > { %v1101_v53 = vmul.f32 %v2446_v52, %v2442_v43  ;;  %v1257_v58 = vpop.permute.xlu1 %1256 }
 0x527   : > { %v1262_v61 = vsel %vm984_vm3, %v1257_v58, 0 }
 0x528   : > { %v1103_v54 = vpack.c.bf16 %v1101_v53, %v1101_v53 }
 0x52a   : > { %2206 = vmatmul.mubr.msk.bf16.vlgmr.msra.gmra.mrb[0].mxu1 %vm1080_vm4, %v1103_v54  ;;  %v1255_v62 = vpop.permute.xlu1 %1254 }
 0x52b   : > { %2216 = vmatpush3.bf16.xpose.msra.mxu1 %v1212_v55  ;;  %2217 = vmatprep.mubr.msk.bf16.mxu1 %vm2990_vm1, %v2989_v3 }
 0x52c   : > { %2227 = vmatprep.subr.bf16.mxu1 %v2989_v3 }
 0x52d   : > { %v2448_v56 = vpop.eup %2447 }
 0x52e   : > { %v1102_v57 = vmul.f32 %v2448_v56, %v2444_v47 }
 0x530   : > { %v1104_v59 = vpack.c.bf16 %v1102_v57, %v1102_v57 }
 0x532   : > { %2212 = vmatmul.mubr.msk.bf16.vlgmr.msra.gmra.mrb[12].mxu0 %vm1080_vm4, %v1104_v59  ;;  %2218 = vmatmul.mubr.msk.bf16.vlgmr.msra.gmra.mrb[4].mxu1 %vm984_vm3, %v1205_v60  ;;  %v2120_v59 = vld [vmem:[%s740_s16] ss:$0 sm:$0xff]  ;;  %s2881_s16 = scalar_lea.vmem %s1793_s19, 256 }
 0x533   : > { %2222 = vmatpush3.bf16.xpose.msra.mxu0 %v1262_v61  ;;  %2223 = vmatprep.mubr.msk.bf16.mxu0 %vm2990_vm1, %v2989_v3  ;;  %p2882_p0 = scmp.ne.s32.totalorder %s1793_s19, %s2881_s16  ;;  %p2889_p3 = scmp.lt.s32.totalorder %s2881_s16, %s2881_s16 }
 0x534   : > { %2233 = vmatprep.subr.bf16.mxu0 %v2989_v3  ;;  %2229 = vmatprep.mubr.msk.bf16.mxu1 %vm2990_vm1, %v2989_v3 }
 0x535   : > { %p2883_p2 = pnand %p2882_p0, %p2360_p8  ;;  %p2890_p6 = por %p2889_p3, %p2888_p13 }
 0x537   : > { %p2884_p4 = pneg %p2883_p2 }
 0x539   : > { %p2891_p11 = pnand %p2890_p6, %p2884_p4 }
 0x53a   : > { %2224 = vmatmul.mubr.msk.bf16.vlgmr.msra.gmra.mrb[16].mxu0 %vm984_vm3, %v1255_v62 }
 0x53b   : > { %2235 = vmatprep.mubr.msk.bf16.mxu0 %vm2990_vm1, %v2989_v3 }
 0x5fd   : > { %v1148_v63 = vpop.f32.mrb[0].mxu1 }
 0x5fe   : > { %1202 = vst.msk [vmem:[#allocation2] sm:$0xff] %vm984_vm3, %v1148_v63  ;;  %v2207_v0 = vpop.f32.mrb[1].mxu1 }
 0x5ff   : > { %v1151_v1 = vpop.f32.mrb[2].mxu1 }
 0x600   : > { %v2208_v2 = vpop.f32.mrb[3].mxu1 }
 0x605   : > { %v1196_v4 = vpop.f32.mrb[12].mxu0  ;;  %v1248_v7 = vpop.f32.mrb[4].mxu1 }
 0x606   : > { %1203 = vst.msk [vmem:[#allocation2 + $0x8] sm:$0xff] %vm984_vm3, %v1196_v4  ;;  %v1249_v8 = vadd.f32 %v1248_v7, %v3647_v21  ;;  %v2213_v9 = vpop.f32.mrb[13].mxu0  ;;  %v2219_v10 = vpop.f32.mrb[5].mxu1 }
 0x607   : > { %v1199_v11 = vpop.f32.mrb[14].mxu0  ;;  %v1251_v12 = vpop.f32.mrb[6].mxu1 }
 0x608   : > { %v2214_v14 = vpop.f32.mrb[15].mxu0  ;;  %v2220_v15 = vpop.f32.mrb[7].mxu1  ;;  %v1304_v17 = vsel %vm1080_vm4, %v1249_v8, -inf }
 0x609   : > { %1305 = vmax.xlane.f32.xlu1 %v1304_v17 }
 0x60d   : > { %v1298_v18 = vpop.f32.mrb[16].mxu0 }
 0x60e   : > { %v1299_v19 = vadd.f32 %v1298_v18, %v3651_v28  ;;  %v2225_v20 = vpop.f32.mrb[17].mxu0 }
 0x60f   : > { %v1301_v22 = vpop.f32.mrb[18].mxu0  ;;  %v2432_v20 = vld [vmem:[%s765_s4 + $0x8] sm:$0xff]  }
 0x610   : > { %v2226_v23 = vpop.f32.mrb[19].mxu0  ;;  %v1307_v24 = vsel %vm1080_vm4, %v1299_v19, -inf  ;;  %v2433_v22 = vld [vmem:[%s3604_s0] sm:$0xff]  }
 0x611   : > { %1308 = vmax.xlane.f32.xlu0 %v1307_v24  ;;  %v2434_v23 = vld [vmem:[%s3604_s0 + $0x8] sm:$0xff]   ;;  %v2435_v24 = vld [vmem:[%s3604_s0 + $0x10] sm:$0xff]  }
 0x627   : > { %1376 = vrot.lane.b32.xlu0 %v3632_v16, %s2995_s18 }
 0x696   : > { %v1306_v21 = vpop.xlane.xlu1 %1305 }
 0x697   : > { %v1310_v25 = vsub.f32 %v1249_v8, %v1306_v21  ;;  %v2436_v21 = vld [vmem:[%s3604_s0 + $0x18] sm:$0xff]  }
 0x699   : > { %v1312_v26 = vmul.f32 1.442695, %v1310_v25  ;;  %v2437_v25 = vld [vmem:[%s3604_s0 + $0x20] sm:$0xff]  }
 0x69b   : > { %2449 = vpow2.f32 %v1312_v26  ;;  %v2438_v26 = vld [vmem:[%s3604_s0 + $0x28] sm:$0xff]  }
 0x69e   : > { %v1309_v27 = vpop.xlane.xlu0 %1308 }
 0x69f   : > { %v1311_v29 = vsub.f32 %v1299_v19, %v1309_v27  ;;  %v2431_v19 = vld [vmem:[%s765_s4] sm:$0xff]  }
 0x6a1   : > { %v1314_v30 = vmul.f32 1.442695, %v1311_v29 }
 0x6a2   : > { %v1377_v31 = vpop.permute.xlu0 %1376 }
 0x6a3   : > { %2451 = vpow2.f32 %v1314_v30  ;;  %v1382_v28 = vsel %vm1110_vm5, %v1377_v31, 0 }
 0x6a4   : > { %2234 = vmatpush3.bf16.msra.mxu0 %v1382_v28 }
 0x6a5   : > { %v2450_v32 = vpop.eup %2449  ;;  %2247 = vmatprep.subr.bf16.mxu0 %v2989_v3 }
 0x6a6   : > { %v1316_v33 = vsel %vm1080_vm4, %v2450_v32, 0.0 }
 0x6a7   : > { %1317 = vadd.xlane.f32.xlu1 %v1316_v33 }
 0x6ad   : > { %v2452_v34 = vpop.eup %2451 }
 0x6ae   : > { %v1319_v16 = vsel %vm1080_vm4, %v2452_v34, 0.0 }
 0x6af   : > { %1320 = vadd.xlane.f32.xlu1 %v1319_v16  ;;  %v2124_v16 = vld [vmem:[%s748_s1] ss:$0 sm:$0xff] }
 0x6c0   : > { %1328 = vrot.lane.b32.xlu1 %v3629_v13, %s2995_s18 }
 0x734   : > { %v1318_v35 = vpop.xlane.xlu1 %1317 }
 0x735   : > { %2453 = vrcp.f32 %v1318_v35 }
 0x73c   : > { %v1321_v36 = vpop.xlane.xlu1 %1320 }
 0x73d   : > { %2455 = vrcp.f32 %v1321_v36 }
 0x73f   : > { %v2454_v37 = vpop.eup %2453 }
 0x740   : > { %v1324_v38 = vmul.f32 %v2454_v37, %v2450_v32  ;;  %v1329_v39 = vpop.permute.xlu1 %1328 }
 0x741   : > { %v1334_v40 = vsel %vm1110_vm5, %v1329_v39, 0 }
 0x742   : > { %2228 = vmatpush3.bf16.msra.mxu1 %v1334_v40  ;;  %v1326_v41 = vpack.c.bf16 %v1324_v38, %v1324_v38  ;;  %v2125_v38 = vld [vmem:[%s756_s2] ss:$0 sm:$0xff] }
 0x743   : > { %2239 = vmatprep.subr.bf16.mxu1 %v2989_v3 }
 0x745   : > { %2230 = vmatmul.mubr.msk.bf16.vlgmr.msra.gmra.mrb[8].mxu1 %vm1080_vm4, %v1326_v41 }
 0x746   : > { %2243 = vmatprep.mubr.msk.bf16.mxu1 %vm2990_vm1, %v2989_v3  ;;  %2240 = vmatpush3.bf16.msra.mxu1 %v2429_v44  ;;  %v2126_v44 = vld [vmem:[%s773_s28] ss:$0 sm:$0xff] }
 0x747   : > { %v2456_v13 = vpop.eup %2455  ;;  %2241 = vmatprep.subr.bf16.mxu1 %v2989_v3 }
 0x748   : > { %v1325_v42 = vmul.f32 %v2456_v13, %v2452_v34 }
 0x74a   : > { %v1327_v43 = vpack.c.bf16 %v1325_v42, %v1325_v42  ;;  %2242 = vmatpush3.bf16.msra.mxu1 %v2430_v45  ;;  %v2439_v42 = vld [vmem:[%s3604_s0 + $0x30] sm:$0xff]  }
 0x74b   : > { %2255 = vmatprep.subr.bf16.mxu1 %v2989_v3 }
 0x74c   : > { %2236 = vmatmul.mubr.msk.bf16.vlgmr.msra.gmra.mrb[20].mxu0 %vm1080_vm4, %v1327_v43  ;;  %v2440_v43 = vld [vmem:[%s3604_s0 + $0x38] sm:$0xff]  }
 0x74d   : > { %2251 = vmatprep.mubr.msk.bf16.mxu0 %vm2990_vm1, %v2989_v3  ;;  %2248 = vmatpush3.bf16.msra.mxu0 %v2431_v19 }
 0x74e   : > { %2249 = vmatprep.subr.bf16.mxu0 %v2989_v3 }
 0x751   : > { %2250 = vmatpush3.bf16.msra.mxu0 %v2432_v20  ;;  %v2139_v20 = vld [vmem:[%s798_s12] ss:$0 sm:$0xff] }
 0x818   : > { %v1370_v46 = vpop.f32.mrb[8].mxu1 }
 0x819   : > { %1426 = vrot.lane.b32.xlu1 %v1370_v46, %s2996_s23  ;;  %v2231_v47 = vpop.f32.mrb[9].mxu1 }
 0x81a   : > { %v1373_v48 = vpop.f32.mrb[10].mxu1 }
 0x81b   : > { %v2232_v49 = vpop.f32.mrb[11].mxu1 }
 0x81f   : > { %v1418_v50 = vpop.f32.mrb[20].mxu0 }
 0x820   : > { %1428 = vrot.lane.b32.xlu1 %v1418_v50, %s2996_s23  ;;  %v2237_v51 = vpop.f32.mrb[21].mxu0 }
 0x821   : > { %v1421_v52 = vpop.f32.mrb[22].mxu0 }
 0x822   : > { %v2238_v53 = vpop.f32.mrb[23].mxu0 }
 0x88b   : > { %v1427_v54 = vpop.permute.xlu1 %1426 }
 0x88c   : > { %1433 = vst.msk [vmem:[#allocation2] sm:$0xff] %vm1432_vm6, %v1427_v54  ;;  %v2130_v54 = vld [vmem:[%s790_s25] ss:$0 sm:$0xff] }
 0x892   : > { %v1429_v55 = vpop.permute.xlu1 %1428 }
 0x893   : > { %1434 = vst.msk [vmem:[#allocation2 + $0x8] sm:$0xff] %vm1432_vm6, %v1429_v55  ;;  %v1435_v56 = vld [vmem:[#allocation2] sm:$0xff] }
 0x89a   : > { %v1436_v57 = vld [vmem:[#allocation2 + $0x8] sm:$0xff] }
 0x89b   : > { %v1437_v58 = vpack.c.bf16 %v1436_v57, %v1435_v56 }
 0x89d   : > { %2244 = vmatmul.mubr.msk.bf16.vlgmr.msra.gmra.mrb[12].mxu1 %vm932_vm2, %v1437_v58 }
 0x89e   : > { %2271 = vmatprep.mubr.msk.bf16.mxu1 %vm2990_vm1, %v2989_v3  ;;  %2256 = vmatpush3.bf16.msra.mxu1 %v2433_v22 }
 0x89f   : > { %2257 = vmatprep.subr.bf16.mxu1 %v2989_v3 }
 0x8a2   : > { %2258 = vmatpush3.bf16.msra.mxu1 %v2434_v23 }
 0x8a3   : > { %2259 = vmatprep.subr.bf16.mxu1 %v2989_v3 }
 0x8a6   : > { %2260 = vmatpush3.bf16.msra.mxu1 %v2435_v24  ;;  %v2140_v24 = vld [vmem:[%s806_s20] ss:$0 sm:$0xff] }
 0x8a7   : > { %2261 = vmatprep.subr.bf16.mxu1 %v2989_v3 }
 0x8aa   : > { %2262 = vmatpush3.bf16.msra.mxu1 %v2436_v21 }
 0x8ab   : > { %2263 = vmatprep.subr.bf16.mxu1 %v2989_v3 }
 0x8ae   : > { %2264 = vmatpush3.bf16.msra.mxu1 %v2437_v25 }
 0x8af   : > { %2265 = vmatprep.subr.bf16.mxu1 %v2989_v3 }
 0x8b2   : > { %2266 = vmatpush3.bf16.msra.mxu1 %v2438_v26 }
 0x8b3   : > { %2267 = vmatprep.subr.bf16.mxu1 %v2989_v3 }
 0x8b6   : > { %2268 = vmatpush3.bf16.msra.mxu1 %v2439_v42 }
 0x8b7   : > { %2269 = vmatprep.subr.bf16.mxu1 %v2989_v3 }
 0x8ba   : > { %2270 = vmatpush3.bf16.msra.mxu1 %v2440_v43 }
 0x970   : > { %v1498_v60 = vpop.f32.mrb[12].mxu1 }
 0x971   : > { %v1499_v61 = vadd.f32 %v2120_v59, %v1498_v60  ;;  %v2245_v62 = vpop.f32.mrb[13].mxu1 }
 0x972   : > { %v1501_v63 = vpop.f32.mrb[14].mxu1 }
 0x973   : > { %v1502_v0 = vadd.f32 %v2120_v59, %v1501_v63  ;;  %v2246_v1 = vpop.f32.mrb[15].mxu1  ;;  %v1505_v2 = vadd.f32 %v1499_v61, %v3614_v5 }
 0x975   : > { %v1509_v4 = vsel %vm932_vm2, %v1505_v2, 0.0  ;;  %v1506_v7 = vadd.f32 %v1502_v0, %v3616_v6 }
 0x976   : > { %1510 = vadd.xlane.f32.xlu0 %v1509_v4 }
 0x977   : > { %v1512_v8 = vsel %vm932_vm2, %v1506_v7, 0.0 }
 0x978   : > { %1513 = vadd.xlane.f32.xlu1 %v1512_v8 }
 0xa03   : > { %v1511_v9 = vpop.xlane.xlu0 %1510 }
 0xa04   : > { %v1516_v10 = vmul.f32 0.03125, %v1511_v9 }
 0xa05   : > { %v1514_v11 = vpop.xlane.xlu1 %1513 }
 0xa06   : > { %v1518_v12 = vsub.f32 %v1505_v2, %v1516_v10  ;;  %v1517_v14 = vmul.f32 0.03125, %v1514_v11 }
 0xa08   : > { %v1519_v15 = vsub.f32 %v1506_v7, %v1517_v14  ;;  %v1520_v17 = vmul.f32 %v1518_v12, %v1518_v12 }
 0xa0a   : > { %v1522_v5 = vsel %vm932_vm2, %v1520_v17, 0.0  ;;  %v1521_v18 = vmul.f32 %v1519_v15, %v1519_v15 }
 0xa0b   : > { %1523 = vadd.xlane.f32.xlu0 %v1522_v5 }
 0xa0c   : > { %v1525_v6 = vsel %vm932_vm2, %v1521_v18, 0.0 }
 0xa0f   : > { %1526 = vadd.xlane.f32.xlu0 %v1525_v6 }
 0xa98   : > { %v1524_v27 = vpop.xlane.xlu0 %1523 }
 0xa99   : > { %v1528_v29 = vmul.f32 0.03125, %v1524_v27 }
 0xa9b   : > { %v1530_v30 = vadd.f32 1e-05, %v1528_v29 }
 0xa9c   : > { %v1527_v31 = vpop.xlane.xlu0 %1526 }
 0xa9d   : > { %2457 = vrsqrt.f32 %v1530_v30  ;;  %v1529_v28 = vmul.f32 0.03125, %v1527_v31 }
 0xa9f   : > { %v1531_v32 = vadd.f32 1e-05, %v1529_v28 }
 0xaa1   : > { %2459 = vrsqrt.f32 %v1531_v32 }
 0xaa7   : > { %v2458_v33 = vpop.eup %2457 }
 0xaa8   : > { %v1534_v34 = vmul.f32 %v2458_v33, %v1518_v12 }
 0xaaa   : > { %v1542_v36 = vmul.f32 %v2124_v16, %v1534_v34 }
 0xaab   : > { %v2460_v35 = vpop.eup %2459 }
 0xaac   : > { %v1535_v37 = vmul.f32 %v2460_v35, %v1519_v15  ;;  %v1550_v40 = vadd.f32 %v2125_v38, %v1542_v36 }
 0xaae   : > { %v1543_v39 = vmul.f32 %v2124_v16, %v1535_v37 }
 0xab0   : > { %v1551_v41 = vadd.f32 %v2125_v38, %v1543_v39 }
 0xab2   : > { %v1552_v13 = vpack.c.bf16 %v1551_v41, %v1550_v40 }
 0xab4   : > { %2252 = vmatmul.mubr.msk.bf16.vlgmr.msra.gmra.mrb[24].mxu0 %vm932_vm2, %v1552_v13 }
 0xb87   : > { %v1613_v45 = vpop.f32.mrb[24].mxu0 }
 0xb88   : > { %v1614_v46 = vadd.f32 %v2126_v44, %v1613_v45  ;;  %v2253_v47 = vpop.f32.mrb[25].mxu0 }
 0xb89   : > { %v1616_v48 = vpop.f32.mrb[26].mxu0 }
 0xb8a   : > { %v1617_v49 = vadd.f32 %v2126_v44, %v1616_v48  ;;  %v2254_v50 = vpop.f32.mrb[27].mxu0  ;;  %v1620_v51 = vmax.f32 %v1614_v46, 0.0 }
 0xb8c   : > { %v1621_v52 = vmax.f32 %v1617_v49, 0.0 }
 0xb8e   : > { %v1622_v53 = vpack.c.bf16 %v1621_v52, %v1620_v51 }
 0xb90   : > { %2272 = vmatmul.mubr.bf16.vlgmr.msra.gmra.mrb[16].mxu1 %v1622_v53 }
 0xc63   : > { %v1728_v55 = vpop.f32.mrb[16].mxu1 }
 0xc64   : > { %v1729_v56 = vadd.f32 %v2130_v54, %v1728_v55  ;;  %v2273_v57 = vpop.f32.mrb[17].mxu1 }
 0xc65   : > { %v1731_v3 = vpop.f32.mrb[18].mxu1 }
 0xc66   : > { %v1732_v58 = vadd.f32 %v2130_v54, %v1731_v3  ;;  %v2274_v59 = vpop.f32.mrb[19].mxu1  ;;  %v1735_v60 = vadd.f32 %v1729_v56, %v1550_v40 }
 0xc68   : > { %v1739_v61 = vsel %vm932_vm2, %v1735_v60, 0.0  ;;  %v1736_v62 = vadd.f32 %v1732_v58, %v1551_v41 }
 0xc69   : > { %1740 = vadd.xlane.f32.xlu1 %v1739_v61 }
 0xc6a   : > { %v1742_v63 = vsel %vm932_vm2, %v1736_v62, 0.0 }
 0xc6b   : > { %1743 = vadd.xlane.f32.xlu0 %v1742_v63 }
 0xcf6   : > { %v1741_v0 = vpop.xlane.xlu1 %1740 }
 0xcf7   : > { %v1745_v1 = vmul.f32 0.03125, %v1741_v0 }
 0xcf8   : > { %v1744_v2 = vpop.xlane.xlu0 %1743 }
 0xcf9   : > { %v1747_v4 = vsub.f32 %v1735_v60, %v1745_v1  ;;  %v1746_v7 = vmul.f32 0.03125, %v1744_v2 }
 0xcfb   : > { %v1748_v8 = vsub.f32 %v1736_v62, %v1746_v7  ;;  %v1749_v9 = vmul.f32 %v1747_v4, %v1747_v4 }
 0xcfd   : > { %v1751_v10 = vsel %vm932_vm2, %v1749_v9, 0.0  ;;  %v1750_v11 = vmul.f32 %v1748_v8, %v1748_v8 }
 0xcfe   : > { %1752 = vadd.xlane.f32.xlu1 %v1751_v10 }
 0xcff   : > { %v1754_v12 = vsel %vm932_vm2, %v1750_v11, 0.0 }
 0xd00   : > { %1755 = vadd.xlane.f32.xlu0 %v1754_v12 }
 0xd8b   : > { %v1753_v14 = vpop.xlane.xlu1 %1752 }
 0xd8c   : > { %v1757_v15 = vmul.f32 0.03125, %v1753_v14 }
 0xd8d   : > { %v1756_v17 = vpop.xlane.xlu0 %1755 }
 0xd8e   : > { %v1759_v5 = vadd.f32 1e-05, %v1757_v15  ;;  %v1758_v18 = vmul.f32 0.03125, %v1756_v17 }
 0xd90   : > { %2461 = vrsqrt.f32 %v1759_v5  ;;  %v1760_v6 = vadd.f32 1e-05, %v1758_v18 }
 0xd92   : > { %2463 = vrsqrt.f32 %v1760_v6 }
 0xd9a   : > { %v2462_v19 = vpop.eup %2461 }
 0xd9b   : > { %v1763_v22 = vmul.f32 %v2462_v19, %v1747_v4 }
 0xd9c   : > { %v2464_v23 = vpop.eup %2463 }
 0xd9d   : > { %v1771_v21 = vmul.f32 %v2139_v20, %v1763_v22  ;;  %v1764_v25 = vmul.f32 %v2464_v23, %v1748_v8 }
 0xd9f   : > { %v1772_v26 = vmul.f32 %v2139_v20, %v1764_v25  ;;  %v1779_v27 = vadd.f32 %v2140_v24, %v1771_v21 }
 0xda1   : > { %v1780_v29 = vadd.f32 %v2140_v24, %v1772_v26  ;;  %1781 = vst.msk [vmem:[#allocation20] sm:$0xff] %vm932_vm2, %v1779_v27 }
 0xda3   : > { %1782 = vst.msk [vmem:[#allocation20 + $0x8] sm:$0xff] %vm932_vm2, %v1780_v29 }
 0xda4   : > { %2894 = shalt.err (!%p2891_p11)
}
 0xda5   : > { %s3915_s2 = sld [smem:[#allocation42_spill]] }
 0xdab   : > { %s2895_s4 = scalar_lea.hbm %s3915_s2, 256 }
 0xdac   : > { %p2896_p5 = scmp.ne.s32.totalorder %s3915_s2, %s2895_s4  ;;  %p2901_p1 = scmp.lt.u32.totalorder %s2895_s4, %s3915_s2 }
 0xdae   : > { %p2897_p10 = pnand %p2896_p5, %p2360_p8 }
 0xdb0   : > { %p2898_p7 = pneg %p2897_p10 }
 0xdb2   : > { %p2903_p9 = pnand %p2901_p1, %p2898_p7 }
 0xdb4   : > { %2906 = shalt.err (!%p2903_p9)
}
 0xdb5   : > { %s2998_s20 = smov 128   ;;  %s2999_s14 = smov 8  }
 0xdb6   : > { %2308 = dma.vmem_to_hbm [thread:$0]  (%p2360_p8), %s1793_s19, 256, %s3915_s2, [#allocation5], %s2998_s20, %s2998_s20, %s2999_s14  }
 0xdb7   : > { %2944 = dma.done.wait (%p2360_p8), [#allocation5], 256  }
 0xdb8   : > { %2946 = vsyncadd (%p2360_p8), [#allocation5], 4294967040 }
 0xdb9 PF: > { %s3916_s24 = sld [smem:[#allocation28_spill]]  ;;  %s3917_s29 = sld [smem:[#allocation25_spill]] }
 0xdba   : > { %s3918_s30 = sld [smem:[#allocation26_spill]]  ;;  %s3919_s15 = sld [smem:[#allocation34_spill]] }
 0xdbb   : > { %s3920_s27 = sld [smem:[#allocation33_spill]]  ;;  %s3921_s16 = smov %s2965_s17 }
 0xdbf   : > { %s27_s18 = sadd.s32 1, %s3916_s24  }
 0xdc0   : > { %p24_p12 = scmp.ge.s32.totalorder %s27_s18, 6  }
 0xdc1   : > { %s3922_s17 = smov %s3920_s27 }
 0xdc2   :  { %26 = sbr.rel (!%p24_p12) target bundleno = 14 (0xe), region = 248 }
 0xdc9   :  { %1808 = vsyncpa [#allocation4], 1 }
 0xdca   :  { %1810 = vsyncpa [#allocation4 + $0x1], 1 }
 0xdcb   :  { %1811 = vsyncpa [#allocation7], 1 }
 0xdcc   :  { %1812 = vsyncpa [#allocation5], 1 }
 0xdcd   :  { %1814 = vsyncpa [#allocation5 + $0x1], 1 }

</bundles_post_ra>
